<compile_context>
chip_gen: v7x
topology: tpu7x:2x2x1
jax: 0.10.0
libtpu: 0.0.40
codegen_flags: <defaults>
</compile_context>

<pallas_src>
import functools

import jax
import jax.numpy as jnp
from jax.experimental import pallas as pl
from jax.experimental.pallas import tpu as pltpu


# ----------------------------------------------------------------------------
# Fused whole-forward kernel (single invocation, everything resident in VMEM).
# ----------------------------------------------------------------------------
def _fused_forward_kernel(*refs, num_layers):
    (he_ref, he_neg_ref, exp_ref, agg_ref, sel_ref, adj_ref) = refs[:6]
    k = 6
    mlp_refs = refs[k:k + 2 * num_layers]
    k += 2 * num_layers
    wg_ref, bg_ref, wd_ref, alpha_ref = refs[k:k + 4]
    loss_ref, xprime_ref = refs[k + 4:]
    f32 = jnp.float32

    # ----------------- Predictor MLP: x_prime = MLP(he_rep) -----------------
    h = he_ref[...]
    for i in range(num_layers):
        w = mlp_refs[2 * i][...]
        b = mlp_refs[2 * i + 1][...]            # (1, F) bias, added in epilogue
        h = jnp.dot(h, w, preferred_element_type=f32) + b
        if i < num_layers - 1:
            h = jnp.maximum(h, 0.0)             # ReLU
    x_prime = h
    xprime_ref[...] = x_prime.astype(xprime_ref.dtype)

    # --------------- spot prediction + selection-masked MSE -----------------
    pred_spot = jnp.dot(agg_ref[...], x_prime, preferred_element_type=f32)
    sel = sel_ref[...]                          # [S, 1] in {0, 1}
    d = (pred_spot - exp_ref[...]) * sel        # mask broadcast over features
    sq = jnp.sum(jnp.sum(d * d, axis=1, keepdims=True), axis=0, keepdims=True)
    cnt = jnp.sum(sel, axis=0, keepdims=True) * float(d.shape[1])
    loss_pre = sq / jnp.maximum(cnt, 1.0)       # (1, 1)

    # ------------------------------ DGI branch ------------------------------
    alpha = alpha_ref[...]                      # (1, 1) learnable PReLU slope
    wg = wg_ref[...]
    bg = bg_ref[...]
    adj = adj_ref[...]

    def gcn(x):
        t = jnp.dot(x, wg, preferred_element_type=f32)        # X W
        z = jnp.dot(adj, t, preferred_element_type=f32) + bg  # A (X W) + b
        return jnp.where(z > 0.0, z, alpha * z)               # PReLU

    h_pos = gcn(he_ref[...])
    h_neg = gcn(he_neg_ref[...])                # corrupted (row-permuted) graph

    mean_h = jnp.mean(h_pos, axis=0, keepdims=True)           # [1, H]
    summary = 1.0 / (1.0 + jnp.exp(-mean_h))                  # sigmoid, [1, H]

    # Bilinear discriminator logits = h W_d s : MXU matmul + VPU row-reduce
    # (avoids 1-wide lane-sparse MXU outputs).
    wd = wd_ref[...]
    hw_pos = jnp.dot(h_pos, wd, preferred_element_type=f32)
    hw_neg = jnp.dot(h_neg, wd, preferred_element_type=f32)
    logits_pos = jnp.sum(hw_pos * summary, axis=1, keepdims=True)   # [N, 1]
    logits_neg = jnp.sum(hw_neg * summary, axis=1, keepdims=True)   # [N, 1]

    def softplus(x):  # numerically stable, uses only exp/log (Mosaic-safe)
        return jnp.maximum(x, 0.0) + jnp.log(1.0 + jnp.exp(-jnp.abs(x)))

    # BCE-with-logits: positives -> 1, negatives -> 0
    loss_dgi = (jnp.mean(softplus(-logits_pos), axis=0, keepdims=True) +
                jnp.mean(softplus(logits_neg), axis=0, keepdims=True))

    loss_ref[...] = (loss_pre + loss_dgi).astype(loss_ref.dtype)


# ----------------------------------------------------------------------------
# Model_vanilla forward: a single fused pallas_call.
# ----------------------------------------------------------------------------
def model_vanilla_forward(params, graph_adj, he_rep, exp, agg_mtx, selection,
                          corrupt_perm):
    pred, dgi = params["predictor"], params["dgi"]
    num_layers = len(pred["w"])
    n_nodes = he_rep.shape[0]
    out_dim = pred["w"][-1].shape[1]
    f32 = jnp.float32

    he = he_rep.astype(f32)
    he_neg = jnp.take(he, corrupt_perm, axis=0)   # DGI corruption (tiny gather)
    sel = selection.astype(f32)[:, None]          # [S, 1] mask column

    mlp_args = []
    for w, b in zip(pred["w"], pred["b"]):
        mlp_args += [w.astype(f32), b.astype(f32).reshape(1, -1)]

    args = (he, he_neg, exp.astype(f32), agg_mtx.astype(f32), sel,
            graph_adj.astype(f32), *mlp_args,
            dgi["w_gcn"].astype(f32), dgi["b_gcn"].astype(f32).reshape(1, -1),
            dgi["w_disc"].astype(f32), dgi["alpha"].astype(f32).reshape(1, 1))

    loss, x_prime = pl.pallas_call(
        functools.partial(_fused_forward_kernel, num_layers=num_layers),
        out_shape=(jax.ShapeDtypeStruct((1, 1), f32),
                   jax.ShapeDtypeStruct((n_nodes, out_dim), f32)),
    )(*args)
    return loss[0, 0], x_prime


# ----------------------------------------------------------------------------
# Pure-JAX reference (for a correctness sanity check only).
# ----------------------------------------------------------------------------
def _reference_forward(params, adj, he, exp, agg, sel, perm):
    pred, dgi = params["predictor"], params["dgi"]
    h = he
    n = len(pred["w"])
    for i, (w, b) in enumerate(zip(pred["w"], pred["b"])):
        h = h @ w + b
        if i < n - 1:
            h = jax.nn.relu(h)
    x_prime = h
    ps = agg @ x_prime
    m = sel.astype(jnp.float32)[:, None]
    d = (ps - exp) * m
    loss_pre = jnp.sum(d * d) / jnp.maximum(jnp.sum(m) * x_prime.shape[1], 1.0)

    alpha = dgi["alpha"]

    def gcn(x):
        z = adj @ (x @ dgi["w_gcn"]) + dgi["b_gcn"]
        return jnp.where(z > 0, z, alpha * z)

    hp, hn = gcn(he), gcn(he[perm])
    s = jax.nn.sigmoid(jnp.mean(hp, axis=0))
    lp = (hp @ dgi["w_disc"]) @ s
    ln = (hn @ dgi["w_disc"]) @ s
    loss_dgi = jnp.mean(jax.nn.softplus(-lp)) + jnp.mean(jax.nn.softplus(ln))
    return loss_pre + loss_dgi, x_prime


# ----------------------------------------------------------------------------
# Deterministic parameter init + example run.
# ----------------------------------------------------------------------------
def init_params(key, in_dim, hidden_dim, out_dim, num_layers):
    dims = [in_dim] + [hidden_dim] * (num_layers - 1) + [out_dim]
    keys = jax.random.split(key, num_layers + 2)
    ws, bs = [], []
    for i in range(num_layers):
        fan_in, fan_out = dims[i], dims[i + 1]
        scale = (2.0 / (fan_in + fan_out)) ** 0.5
        ws.append(scale * jax.random.normal(keys[i], (fan_in, fan_out),
                                            jnp.float32))
        bs.append(jnp.zeros((fan_out,), jnp.float32))
    w_gcn = ((2.0 / (in_dim + hidden_dim)) ** 0.5 *
             jax.random.normal(keys[num_layers], (in_dim, hidden_dim),
                               jnp.float32))
    b_gcn = jnp.zeros((hidden_dim,), jnp.float32)
    w_disc = ((1.0 / hidden_dim) ** 0.5 *
              jax.random.normal(keys[num_layers + 1], (hidden_dim, hidden_dim),
                                jnp.float32))
    return {"predictor": {"w": ws, "b": bs},
            "dgi": {"w_gcn": w_gcn, "b_gcn": b_gcn, "w_disc": w_disc,
                    "alpha": jnp.array(0.25, jnp.float32)}}  # PReLU init


if __name__ == "__main__":
    # Small shapes consistent with the module's forward signature.
    N_NODES, IN_DIM, HIDDEN_DIM, OUT_DIM = 64, 32, 64, 24
    N_SPOTS, NUM_LAYERS = 16, 3

    key = jax.random.PRNGKey(0)
    k_par, k_x, k_exp, k_adj, k_agg, k_sel, k_perm = jax.random.split(key, 7)

    params = init_params(k_par, IN_DIM, HIDDEN_DIM, OUT_DIM, NUM_LAYERS)

    he_rep = jax.random.normal(k_x, (N_NODES, IN_DIM), jnp.float32)
    exp = jax.random.normal(k_exp, (N_SPOTS, OUT_DIM), jnp.float32)

    # dense symmetric row-normalised adjacency with self loops
    a = (jax.random.uniform(k_adj, (N_NODES, N_NODES)) < 0.2).astype(jnp.float32)
    a = jnp.maximum(a, a.T) + jnp.eye(N_NODES, dtype=jnp.float32)
    graph_adj = a / jnp.sum(a, axis=1, keepdims=True)

    # row-normalised spot<-node aggregation matrix
    agg = jax.random.uniform(k_agg, (N_SPOTS, N_NODES), jnp.float32)
    agg_mtx = agg / jnp.sum(agg, axis=1, keepdims=True)

    selection = jax.random.uniform(k_sel, (N_SPOTS,)) < 0.5   # bool spot mask
    corrupt_perm = jax.random.permutation(k_perm, N_NODES)    # DGI corruption

    loss, x_prime = jax.jit(model_vanilla_forward)(
        params, graph_adj, he_rep, exp, agg_mtx, selection, corrupt_perm)
    jax.block_until_ready((loss, x_prime))

    # Sanity check against a pure-JAX reference (loose tol for MXU precision).
    ref_loss, ref_x = jax.jit(_reference_forward)(
        params, graph_adj, he_rep, exp, agg_mtx, selection, corrupt_perm)
    jax.block_until_ready((ref_loss, ref_x))
    assert loss.shape == () and x_prime.shape == (N_NODES, OUT_DIM)
    assert abs(float(loss) - float(ref_loss)) < 5e-2
    assert float(jnp.max(jnp.abs(x_prime - ref_x))) < 5e-2

    print("KERNEL_OK")
</pallas_src>

<mosaic_0001>
module attributes {stable_mosaic.version = 11 : i64} {
  func.func @_fused_forward_kernel(%arg0: memref<64x32xf32, #tpu.memory_space<vmem>>, %arg1: memref<64x32xf32, #tpu.memory_space<vmem>>, %arg2: memref<16x24xf32, #tpu.memory_space<vmem>>, %arg3: memref<16x64xf32, #tpu.memory_space<vmem>>, %arg4: memref<16x1xf32, #tpu.memory_space<vmem>>, %arg5: memref<64x64xf32, #tpu.memory_space<vmem>>, %arg6: memref<32x64xf32, #tpu.memory_space<vmem>>, %arg7: memref<1x64xf32, #tpu.memory_space<vmem>>, %arg8: memref<64x64xf32, #tpu.memory_space<vmem>>, %arg9: memref<1x64xf32, #tpu.memory_space<vmem>>, %arg10: memref<64x24xf32, #tpu.memory_space<vmem>>, %arg11: memref<1x24xf32, #tpu.memory_space<vmem>>, %arg12: memref<32x64xf32, #tpu.memory_space<vmem>>, %arg13: memref<1x64xf32, #tpu.memory_space<vmem>>, %arg14: memref<64x64xf32, #tpu.memory_space<vmem>>, %arg15: memref<1x1xf32, #tpu.memory_space<vmem>>, %arg16: memref<1x1xf32, #tpu.memory_space<vmem>>, %arg17: memref<64x24xf32, #tpu.memory_space<vmem>>) attributes {dimension_semantics = [], scalar_prefetch = 0 : i64, scratch_operands = 0 : i64, tpu.core_type = #tpu.core_type<tc>} {
    %c0 = arith.constant 0 : index
    %c0_0 = arith.constant 0 : index
    %0 = vector.load %arg0[%c0, %c0_0] : memref<64x32xf32, #tpu.memory_space<vmem>>, vector<64x32xf32>
    %c0_1 = arith.constant 0 : index
    %c0_2 = arith.constant 0 : index
    %1 = vector.load %arg6[%c0_1, %c0_2] : memref<32x64xf32, #tpu.memory_space<vmem>>, vector<32x64xf32>
    %c0_3 = arith.constant 0 : index
    %c0_4 = arith.constant 0 : index
    %2 = vector.load %arg7[%c0_3, %c0_4] : memref<1x64xf32, #tpu.memory_space<vmem>>, vector<1x64xf32>
    %cst = arith.constant dense<0.000000e+00> : vector<64x64xf32>
    %3 = tpu.matmul %0, %1, %cst {dimension_numbers = #tpu.dot_dimension_numbers<[1], [0], [0], [1], [0, 0, 1, 1], [], []>} : vector<64x32xf32>, vector<32x64xf32>, vector<64x64xf32> -> vector<64x64xf32>
    %4 = vector.broadcast %2 : vector<1x64xf32> to vector<64x64xf32>
    %5 = arith.addf %3, %4 : vector<64x64xf32>
    %cst_5 = arith.constant 0.000000e+00 : f32
    %6 = vector.broadcast %cst_5 : f32 to vector<64x64xf32>
    %7 = arith.maximumf %5, %6 : vector<64x64xf32>
    %c0_6 = arith.constant 0 : index
    %c0_7 = arith.constant 0 : index
    %8 = vector.load %arg8[%c0_6, %c0_7] : memref<64x64xf32, #tpu.memory_space<vmem>>, vector<64x64xf32>
    %c0_8 = arith.constant 0 : index
    %c0_9 = arith.constant 0 : index
    %9 = vector.load %arg9[%c0_8, %c0_9] : memref<1x64xf32, #tpu.memory_space<vmem>>, vector<1x64xf32>
    %cst_10 = arith.constant dense<0.000000e+00> : vector<64x64xf32>
    %10 = tpu.matmul %7, %8, %cst_10 {dimension_numbers = #tpu.dot_dimension_numbers<[1], [0], [0], [1], [0, 0, 1, 1], [], []>} : vector<64x64xf32>, vector<64x64xf32>, vector<64x64xf32> -> vector<64x64xf32>
    %11 = vector.broadcast %9 : vector<1x64xf32> to vector<64x64xf32>
    %12 = arith.addf %10, %11 : vector<64x64xf32>
    %cst_11 = arith.constant 0.000000e+00 : f32
    %13 = vector.broadcast %cst_11 : f32 to vector<64x64xf32>
    %14 = arith.maximumf %12, %13 : vector<64x64xf32>
    %c0_12 = arith.constant 0 : index
    %c0_13 = arith.constant 0 : index
    %15 = vector.load %arg10[%c0_12, %c0_13] : memref<64x24xf32, #tpu.memory_space<vmem>>, vector<64x24xf32>
    %c0_14 = arith.constant 0 : index
    %c0_15 = arith.constant 0 : index
    %16 = vector.load %arg11[%c0_14, %c0_15] : memref<1x24xf32, #tpu.memory_space<vmem>>, vector<1x24xf32>
    %cst_16 = arith.constant dense<0.000000e+00> : vector<64x24xf32>
    %17 = tpu.matmul %14, %15, %cst_16 {dimension_numbers = #tpu.dot_dimension_numbers<[1], [0], [0], [1], [0, 0, 1, 1], [], []>} : vector<64x64xf32>, vector<64x24xf32>, vector<64x24xf32> -> vector<64x24xf32>
    %18 = vector.broadcast %16 : vector<1x24xf32> to vector<64x24xf32>
    %19 = arith.addf %17, %18 : vector<64x24xf32>
    %c0_17 = arith.constant 0 : index
    %c0_18 = arith.constant 0 : index
    %20 = vector.load %arg17[%c0_17, %c0_18] : memref<64x24xf32, #tpu.memory_space<vmem>>, vector<64x24xf32>
    tpu.vector_store %arg17[%c0_17, %c0_18], %19 {strides = array<i32>} : memref<64x24xf32, #tpu.memory_space<vmem>>, vector<64x24xf32>,
    %c0_19 = arith.constant 0 : index
    %c0_20 = arith.constant 0 : index
    %21 = vector.load %arg3[%c0_19, %c0_20] : memref<16x64xf32, #tpu.memory_space<vmem>>, vector<16x64xf32>
    %cst_21 = arith.constant dense<0.000000e+00> : vector<16x24xf32>
    %22 = tpu.matmul %21, %19, %cst_21 {dimension_numbers = #tpu.dot_dimension_numbers<[1], [0], [0], [1], [0, 0, 1, 1], [], []>} : vector<16x64xf32>, vector<64x24xf32>, vector<16x24xf32> -> vector<16x24xf32>
    %c0_22 = arith.constant 0 : index
    %c0_23 = arith.constant 0 : index
    %23 = vector.load %arg4[%c0_22, %c0_23] : memref<16x1xf32, #tpu.memory_space<vmem>>, vector<16x1xf32>
    %c0_24 = arith.constant 0 : index
    %c0_25 = arith.constant 0 : index
    %24 = vector.load %arg2[%c0_24, %c0_25] : memref<16x24xf32, #tpu.memory_space<vmem>>, vector<16x24xf32>
    %25 = arith.subf %22, %24 : vector<16x24xf32>
    %26 = vector.broadcast %23 : vector<16x1xf32> to vector<16x24xf32>
    %27 = arith.mulf %25, %26 : vector<16x24xf32>
    %28 = arith.mulf %27, %27 : vector<16x24xf32>
    %cst_26 = arith.constant dense<0.000000e+00> : vector<16xf32>
    %29 = vector.multi_reduction <add>, %28, %cst_26 [1] : vector<16x24xf32> to vector<16xf32>
    %30 = vector.shape_cast %29 : vector<16xf32> to vector<16x1xf32>
    %cst_27 = arith.constant dense<0.000000e+00> : vector<1xf32>
    %31 = vector.multi_reduction <add>, %30, %cst_27 [0] : vector<16x1xf32> to vector<1xf32>
    %32 = vector.shape_cast %31 : vector<1xf32> to vector<1x1xf32>
    %cst_28 = arith.constant dense<0.000000e+00> : vector<1xf32>
    %33 = vector.multi_reduction <add>, %23, %cst_28 [0] : vector<16x1xf32> to vector<1xf32>
    %34 = vector.shape_cast %33 : vector<1xf32> to vector<1x1xf32>
    %cst_29 = arith.constant 2.400000e+01 : f32
    %35 = vector.broadcast %cst_29 : f32 to vector<1x1xf32>
    %36 = arith.mulf %34, %35 : vector<1x1xf32>
    %cst_30 = arith.constant 1.000000e+00 : f32
    %37 = vector.broadcast %cst_30 : f32 to vector<1x1xf32>
    %38 = arith.maximumf %36, %37 : vector<1x1xf32>
    %39 = arith.divf %32, %38 : vector<1x1xf32>
    %c0_31 = arith.constant 0 : index
    %c0_32 = arith.constant 0 : index
    %40 = vector.load %arg15[%c0_31, %c0_32] : memref<1x1xf32, #tpu.memory_space<vmem>>, vector<1x1xf32>
    %c0_33 = arith.constant 0 : index
    %c0_34 = arith.constant 0 : index
    %41 = vector.load %arg12[%c0_33, %c0_34] : memref<32x64xf32, #tpu.memory_space<vmem>>, vector<32x64xf32>
    %c0_35 = arith.constant 0 : index
    %c0_36 = arith.constant 0 : index
    %42 = vector.load %arg13[%c0_35, %c0_36] : memref<1x64xf32, #tpu.memory_space<vmem>>, vector<1x64xf32>
    %c0_37 = arith.constant 0 : index
    %c0_38 = arith.constant 0 : index
    %43 = vector.load %arg5[%c0_37, %c0_38] : memref<64x64xf32, #tpu.memory_space<vmem>>, vector<64x64xf32>
    %c0_39 = arith.constant 0 : index
    %c0_40 = arith.constant 0 : index
    %44 = vector.load %arg0[%c0_39, %c0_40] : memref<64x32xf32, #tpu.memory_space<vmem>>, vector<64x32xf32>
    %cst_41 = arith.constant dense<0.000000e+00> : vector<64x64xf32>
    %45 = tpu.matmul %44, %41, %cst_41 {dimension_numbers = #tpu.dot_dimension_numbers<[1], [0], [0], [1], [0, 0, 1, 1], [], []>} : vector<64x32xf32>, vector<32x64xf32>, vector<64x64xf32> -> vector<64x64xf32>
    %cst_42 = arith.constant dense<0.000000e+00> : vector<64x64xf32>
    %46 = tpu.matmul %43, %45, %cst_42 {dimension_numbers = #tpu.dot_dimension_numbers<[1], [0], [0], [1], [0, 0, 1, 1], [], []>} : vector<64x64xf32>, vector<64x64xf32>, vector<64x64xf32> -> vector<64x64xf32>
    %47 = vector.broadcast %42 : vector<1x64xf32> to vector<64x64xf32>
    %48 = arith.addf %46, %47 : vector<64x64xf32>
    %cst_43 = arith.constant 0.000000e+00 : f32
    %49 = vector.broadcast %cst_43 : f32 to vector<64x64xf32>
    %50 = arith.cmpf ogt, %48, %49 : vector<64x64xf32>
    %51 = vector.broadcast %40 : vector<1x1xf32> to vector<64x64xf32>
    %52 = arith.mulf %51, %48 : vector<64x64xf32>
    %53 = arith.select %50, %48, %52 : vector<64x64xi1>, vector<64x64xf32>
    %c0_44 = arith.constant 0 : index
    %c0_45 = arith.constant 0 : index
    %54 = vector.load %arg1[%c0_44, %c0_45] : memref<64x32xf32, #tpu.memory_space<vmem>>, vector<64x32xf32>
    %cst_46 = arith.constant dense<0.000000e+00> : vector<64x64xf32>
    %55 = tpu.matmul %54, %41, %cst_46 {dimension_numbers = #tpu.dot_dimension_numbers<[1], [0], [0], [1], [0, 0, 1, 1], [], []>} : vector<64x32xf32>, vector<32x64xf32>, vector<64x64xf32> -> vector<64x64xf32>
    %cst_47 = arith.constant dense<0.000000e+00> : vector<64x64xf32>
    %56 = tpu.matmul %43, %55, %cst_47 {dimension_numbers = #tpu.dot_dimension_numbers<[1], [0], [0], [1], [0, 0, 1, 1], [], []>} : vector<64x64xf32>, vector<64x64xf32>, vector<64x64xf32> -> vector<64x64xf32>
    %57 = vector.broadcast %42 : vector<1x64xf32> to vector<64x64xf32>
    %58 = arith.addf %56, %57 : vector<64x64xf32>
    %cst_48 = arith.constant 0.000000e+00 : f32
    %59 = vector.broadcast %cst_48 : f32 to vector<64x64xf32>
    %60 = arith.cmpf ogt, %58, %59 : vector<64x64xf32>
    %61 = vector.broadcast %40 : vector<1x1xf32> to vector<64x64xf32>
    %62 = arith.mulf %61, %58 : vector<64x64xf32>
    %63 = arith.select %60, %58, %62 : vector<64x64xi1>, vector<64x64xf32>
    %cst_49 = arith.constant dense<0.000000e+00> : vector<64xf32>
    %64 = vector.multi_reduction <add>, %53, %cst_49 [0] : vector<64x64xf32> to vector<64xf32>
    %65 = vector.shape_cast %64 : vector<64xf32> to vector<1x64xf32>
    %cst_50 = arith.constant 6.400000e+01 : f32
    %66 = vector.broadcast %cst_50 : f32 to vector<1x64xf32>
    %67 = arith.divf %65, %66 : vector<1x64xf32>
    %cst_51 = arith.constant 0.000000e+00 : f32
    %68 = vector.broadcast %cst_51 : f32 to vector<1x64xf32>
    %69 = arith.subf %68, %67 : vector<1x64xf32>
    %70 = math.exp %69 : vector<1x64xf32>
    %cst_52 = arith.constant 1.000000e+00 : f32
    %71 = vector.broadcast %cst_52 : f32 to vector<1x64xf32>
    %72 = arith.addf %71, %70 : vector<1x64xf32>
    %cst_53 = arith.constant 1.000000e+00 : f32
    %73 = vector.broadcast %cst_53 : f32 to vector<1x64xf32>
    %74 = arith.divf %73, %72 : vector<1x64xf32>
    %c0_54 = arith.constant 0 : index
    %c0_55 = arith.constant 0 : index
    %75 = vector.load %arg14[%c0_54, %c0_55] : memref<64x64xf32, #tpu.memory_space<vmem>>, vector<64x64xf32>
    %cst_56 = arith.constant dense<0.000000e+00> : vector<64x64xf32>
    %76 = tpu.matmul %53, %75, %cst_56 {dimension_numbers = #tpu.dot_dimension_numbers<[1], [0], [0], [1], [0, 0, 1, 1], [], []>} : vector<64x64xf32>, vector<64x64xf32>, vector<64x64xf32> -> vector<64x64xf32>
    %cst_57 = arith.constant dense<0.000000e+00> : vector<64x64xf32>
    %77 = tpu.matmul %63, %75, %cst_57 {dimension_numbers = #tpu.dot_dimension_numbers<[1], [0], [0], [1], [0, 0, 1, 1], [], []>} : vector<64x64xf32>, vector<64x64xf32>, vector<64x64xf32> -> vector<64x64xf32>
    %78 = vector.broadcast %74 : vector<1x64xf32> to vector<64x64xf32>
    %79 = arith.mulf %76, %78 : vector<64x64xf32>
    %cst_58 = arith.constant dense<0.000000e+00> : vector<64xf32>
    %80 = vector.multi_reduction <add>, %79, %cst_58 [1] : vector<64x64xf32> to vector<64xf32>
    %81 = vector.shape_cast %80 : vector<64xf32> to vector<64x1xf32>
    %82 = vector.broadcast %74 : vector<1x64xf32> to vector<64x64xf32>
    %83 = arith.mulf %77, %82 : vector<64x64xf32>
    %cst_59 = arith.constant dense<0.000000e+00> : vector<64xf32>
    %84 = vector.multi_reduction <add>, %83, %cst_59 [1] : vector<64x64xf32> to vector<64xf32>
    %85 = vector.shape_cast %84 : vector<64xf32> to vector<64x1xf32>
    %cst_60 = arith.constant 0.000000e+00 : f32
    %86 = vector.broadcast %cst_60 : f32 to vector<64x1xf32>
    %87 = arith.subf %86, %81 : vector<64x1xf32>
    %cst_61 = arith.constant 0.000000e+00 : f32
    %88 = vector.broadcast %cst_61 : f32 to vector<64x1xf32>
    %89 = arith.maximumf %87, %88 : vector<64x1xf32>
    %90 = math.absf %87 : vector<64x1xf32>
    %cst_62 = arith.constant 0.000000e+00 : f32
    %91 = vector.broadcast %cst_62 : f32 to vector<64x1xf32>
    %92 = arith.subf %91, %90 : vector<64x1xf32>
    %93 = math.exp %92 : vector<64x1xf32>
    %cst_63 = arith.constant 1.000000e+00 : f32
    %94 = vector.broadcast %cst_63 : f32 to vector<64x1xf32>
    %95 = arith.addf %94, %93 : vector<64x1xf32>
    %96 = math.log %95 : vector<64x1xf32>
    %97 = arith.addf %89, %96 : vector<64x1xf32>
    %cst_64 = arith.constant dense<0.000000e+00> : vector<1xf32>
    %98 = vector.multi_reduction <add>, %97, %cst_64 [0] : vector<64x1xf32> to vector<1xf32>
    %99 = vector.shape_cast %98 : vector<1xf32> to vector<1x1xf32>
    %cst_65 = arith.constant 6.400000e+01 : f32
    %100 = vector.broadcast %cst_65 : f32 to vector<1x1xf32>
    %101 = arith.divf %99, %100 : vector<1x1xf32>
    %cst_66 = arith.constant 0.000000e+00 : f32
    %102 = vector.broadcast %cst_66 : f32 to vector<64x1xf32>
    %103 = arith.maximumf %85, %102 : vector<64x1xf32>
    %104 = math.absf %85 : vector<64x1xf32>
    %cst_67 = arith.constant 0.000000e+00 : f32
    %105 = vector.broadcast %cst_67 : f32 to vector<64x1xf32>
    %106 = arith.subf %105, %104 : vector<64x1xf32>
    %107 = math.exp %106 : vector<64x1xf32>
    %cst_68 = arith.constant 1.000000e+00 : f32
    %108 = vector.broadcast %cst_68 : f32 to vector<64x1xf32>
    %109 = arith.addf %108, %107 : vector<64x1xf32>
    %110 = math.log %109 : vector<64x1xf32>
    %111 = arith.addf %103, %110 : vector<64x1xf32>
    %cst_69 = arith.constant dense<0.000000e+00> : vector<1xf32>
    %112 = vector.multi_reduction <add>, %111, %cst_69 [0] : vector<64x1xf32> to vector<1xf32>
    %113 = vector.shape_cast %112 : vector<1xf32> to vector<1x1xf32>
    %cst_70 = arith.constant 6.400000e+01 : f32
    %114 = vector.broadcast %cst_70 : f32 to vector<1x1xf32>
    %115 = arith.divf %113, %114 : vector<1x1xf32>
    %116 = arith.addf %101, %115 : vector<1x1xf32>
    %117 = arith.addf %39, %116 : vector<1x1xf32>
    %c0_71 = arith.constant 0 : index
    %c0_72 = arith.constant 0 : index
    %118 = vector.load %arg16[%c0_71, %c0_72] : memref<1x1xf32, #tpu.memory_space<vmem>>, vector<1x1xf32>
    tpu.vector_store %arg16[%c0_71, %c0_72], %117 {strides = array<i32>} : memref<1x1xf32, #tpu.memory_space<vmem>>, vector<1x1xf32>,
    return
  }
}

</mosaic_0001>

<bundles_post_ra>
// kernel: model_vanilla_forward.1
= control target key start
LH: loop header
LB: loop body
LE: loop exit
PB: predicated region body
PF: predicated region fallthrough
CT: control target
= control target key end

     0   :  { %s3136_s0 = inlined_call_operand.vmem [shape: f32[64,32], index: 0, kind: input, shape index: {}]   ;;  %s3137_s1 = inlined_call_operand.vmem [shape: f32[64,32], index: 1, kind: input, shape index: {}]   ;;  %s3138_s2 = inlined_call_operand.vmem [shape: f32[16,24], index: 2, kind: input, shape index: {}]   ;;  %s3139_s3 = inlined_call_operand.vmem [shape: f32[16,64], index: 3, kind: input, shape index: {}]   ;;  %s3140_s4 = inlined_call_operand.vmem [shape: f32[16,1], index: 4, kind: input, shape index: {}]   ;;  %s3141_s5 = inlined_call_operand.vmem [shape: f32[64,64], index: 5, kind: input, shape index: {}]   ;;  %s3142_s6 = inlined_call_operand.vmem [shape: f32[32,64], index: 6, kind: input, shape index: {}]   ;;  %s3143_s7 = inlined_call_operand.vmem [shape: f32[1,64], index: 7, kind: input, shape index: {}]   ;;  %s3144_s8 = inlined_call_operand.vmem [shape: f32[64,64], index: 8, kind: input, shape index: {}]   ;;  %s3145_s9 = inlined_call_operand.vmem [shape: f32[1,64], index: 9, kind: input, shape index: {}]   ;;  %s3146_s10 = inlined_call_operand.vmem [shape: f32[64,24], index: 10, kind: input, shape index: {}]   ;;  %s3147_s11 = inlined_call_operand.vmem [shape: f32[1,24], index: 11, kind: input, shape index: {}]   ;;  %s3148_s12 = inlined_call_operand.vmem [shape: f32[32,64], index: 12, kind: input, shape index: {}]   ;;  %s3149_s13 = inlined_call_operand.vmem [shape: f32[1,64], index: 13, kind: input, shape index: {}]   ;;  %s3150_s14 = inlined_call_operand.vmem [shape: f32[64,64], index: 14, kind: input, shape index: {}]   ;;  %s3151_s15 = inlined_call_operand.<no memory space> [shape: f32[1,1], index: 15, kind: input, shape index: {}]   ;;  %s3152_s16 = inlined_call_operand.hbm [shape: f32[1,1], index: 16, kind: output, shape index: {0}]   ;;  %s3153_s17 = inlined_call_operand.vmem [shape: f32[64,24], index: 17, kind: output, shape index: {1}]  }
   0x1   :  { %3156 = sst [smem:[#allocation6_spill]] %s3136_s0  ;;  %v23_v0 = vstv %s3151_s15 }
   0x2   :  { %3157 = sst [smem:[#allocation7_spill]] %s3137_s1  ;;  %24 = vst [vmem:[#allocation2] sm:$0x1] %v23_v0 }
   0x3   :  { %v66_v1 = vld [vmem:[%s3142_s6] sm:$0xff]  ;;  %v67_v2 = vld [vmem:[%s3142_s6 + $0x8] sm:$0xff]  ;;  %v68_v3 = vld [vmem:[%s3142_s6 + $0x10] sm:$0xff]  ;;  %vm77_vm0 = vcmask 261120   ;;  %s3158_s20 = sld [smem:[#allocation6_spill]] }
   0x4   :  { %v2265_v4 = vpack.c.bf16 %v67_v2, %v66_v1  ;;  %v69_v5 = vld [vmem:[%s3142_s6 + $0x18] sm:$0xff]  ;;  %v215_v8 = vld [vmem:[%s3144_s8] sm:$0xff]  ;;  %v216_v9 = vld [vmem:[%s3144_s8 + $0x8] sm:$0xff] }
   0x5   :  { %v2269_v7 = vpack.c.bf16 %v69_v5, %v68_v3  ;;  %v217_v10 = vld [vmem:[%s3144_s8 + $0x10] sm:$0xff]  ;;  %v2273_v11 = vpack.c.bf16 %v216_v9, %v215_v8  ;;  %v218_v12 = vld [vmem:[%s3144_s8 + $0x18] sm:$0xff]  ;;  %v219_v14 = vld [vmem:[%s3144_s8 + $0x20] sm:$0xff] }
   0x6   :  { %2266 = vmatprep.subr.bf16.mxu0 %v2265_v4  ;;  %v2277_v13 = vpack.c.bf16 %v218_v12, %v217_v10  ;;  %v220_v15 = vld [vmem:[%s3144_s8 + $0x28] sm:$0xff] }
   0x7   :  { %2268 = vmatpush3.bf16.msra.mxu0 %v2265_v4 }
   0x8   :  { %2270 = vmatprep.subr.bf16.mxu0 %v2269_v7 }
   0x9   :  { %v2617_v6 = vld [vmem:[%s3158_s20] sm:$0xff] }
   0xa   :  { %2026 = vmatprep.mubr.msk.f32.mxu0 %vm77_vm0, %v2617_v6 }
   0xb   :  { %25 = vsyncpa [#allocation4], 0  ;;  %2274 = vmatprep.subr.bf16.mxu1 %v2273_v11  ;;  %2272 = vmatpush3.bf16.msra.mxu0 %v2269_v7  ;;  %v2642_v16 = vld [vmem:[%s3158_s20 + $0x8] sm:$0xff]  ;;  %v2647_v17 = vld [vmem:[%s3158_s20 + $0x10] sm:$0xff]  ;;  %v2281_v18 = vpack.c.bf16 %v220_v15, %v219_v14  ;;  %vm230_vm1 = vcmask 523264   ;;  %vm637_vm2 = vcmask 7168  }
   0xc   :  { %2276 = vmatpush3.bf16.msra.mxu1 %v2273_v11  ;;  %v2656_v19 = vld [vmem:[%s3158_s20 + $0x18] sm:$0xff]  ;;  %v2661_v20 = vld [vmem:[%s3158_s20 + $0x20] sm:$0xff]  ;;  %v2670_v21 = vld [vmem:[%s3158_s20 + $0x28] sm:$0xff]  ;;  %vm512_vm3 = vcmask 195584  }
   0xd   :  { %2278 = vmatprep.subr.bf16.mxu1 %v2277_v13  ;;  %v2675_v22 = vld [vmem:[%s3158_s20 + $0x30] sm:$0xff]  ;;  %v2684_v23 = vld [vmem:[%s3158_s20 + $0x38] sm:$0xff]  ;;  %v368_v27 = vld [vmem:[%s3146_s10] sm:$0xff] }
   0xe   :  { %2027 = vmatmul.mubr.msk.f32.vlgmr.msra.gmra.mrb[0].mxu0 %vm77_vm0, %v2642_v16  ;;  %v221_v24 = vld [vmem:[%s3144_s8 + $0x30] sm:$0xff]  ;;  %v222_v25 = vld [vmem:[%s3144_s8 + $0x38] sm:$0xff]  ;;  %v369_v28 = vld [vmem:[%s3146_s10 + $0x8] sm:$0xff]  ;;  %s3159_s8 = sld [smem:[#allocation7_spill]] }
   0xf   :  { %2029 = vmatprep.mubr.msk.f32.mxu0 %vm77_vm0, %v2647_v17  ;;  %v2285_v26 = vpack.c.bf16 %v222_v25, %v221_v24  ;;  %v370_v29 = vld [vmem:[%s3146_s10 + $0x10] sm:$0xff]  ;;  %v2289_v30 = vpack.c.bf16 %v369_v28, %v368_v27  ;;  %v371_v31 = vld [vmem:[%s3146_s10 + $0x18] sm:$0xff]  ;;  %v372_v33 = vld [vmem:[%s3146_s10 + $0x20] sm:$0xff] }
  0x10   :  { %2280 = vmatpush3.bf16.msra.mxu1 %v2277_v13  ;;  %v2293_v32 = vpack.c.bf16 %v371_v31, %v370_v29  ;;  %v373_v34 = vld [vmem:[%s3146_s10 + $0x28] sm:$0xff]  ;;  %v1797_v36 = vld [vmem:[%s3143_s7] ss:$0 sm:$0xff]  ;;  %v374_v61 = vld [vmem:[%s3146_s10 + $0x30] sm:$0xff] }
  0x11   :  { %2282 = vmatprep.subr.bf16.mxu1 %v2281_v18  ;;  %2290 = vmatprep.subr.bf16.mxu0 %v2289_v30  ;;  %v2297_v35 = vpack.c.bf16 %v373_v34, %v372_v33  ;;  %v375_v62 = vld [vmem:[%s3146_s10 + $0x38] sm:$0xff]  ;;  %v652_v0 = vld [vmem:[%s3148_s12] sm:$0xff]  ;;  %v653_v1 = vld [vmem:[%s3148_s12 + $0x8] sm:$0xff] }
  0x12   :  { %2030 = vmatmul.mubr.msk.f32.gmra.mrb[2].mxu0 %vm77_vm0, %v2656_v19  ;;  %v2301_v63 = vpack.c.bf16 %v375_v62, %v374_v61  ;;  %v2321_v2 = vpack.c.bf16 %v653_v1, %v652_v0  ;;  %v1806_v3 = vld [vmem:[%s3145_s9] ss:$0 sm:$0xff]  ;;  %v654_v9 = vld [vmem:[%s3148_s12 + $0x10] sm:$0xff]  ;;  %v655_v10 = vld [vmem:[%s3148_s12 + $0x18] sm:$0xff] }
  0x13   :  { %2032 = vmatprep.mubr.msk.f32.mxu0 %vm77_vm0, %v2661_v20  ;;  %2292 = vmatpush3.bf16.msra.mxu0 %v2289_v30 }
  0x14   :  { %2284 = vmatpush3.bf16.msra.mxu1 %v2281_v18  ;;  %2294 = vmatprep.subr.bf16.mxu0 %v2293_v32  ;;  %v2325_v18 = vpack.c.bf16 %v655_v10, %v654_v9  ;;  %v657_v10 = vld [vmem:[%s3141_s5] sm:$0xff] }
  0x15   :  { %2286 = vmatprep.subr.bf16.mxu1 %v2285_v26 }
  0x16   :  { %2033 = vmatmul.mubr.msk.f32.gmra.mrb[4].mxu0 %vm77_vm0, %v2670_v21 }
  0x17   :  { %2035 = vmatprep.mubr.msk.f32.mxu0 %vm77_vm0, %v2675_v22  ;;  %2296 = vmatpush3.bf16.msra.mxu0 %v2293_v32 }
  0x18   :  { %2288 = vmatpush3.bf16.msra.mxu1 %v2285_v26  ;;  %2298 = vmatprep.subr.bf16.mxu0 %v2297_v35 }
  0x1a   :  { %2036 = vmatmul.mubr.msk.f32.gmra.mrb[6].mxu0 %vm77_vm0, %v2684_v23 }
  0x1b   :  { %2300 = vmatpush3.bf16.msra.mxu0 %v2297_v35 }
  0x1c   :  { %2302 = vmatprep.subr.bf16.mxu0 %v2301_v63 }
  0x1f   :  { %2304 = vmatpush3.bf16.msra.mxu0 %v2301_v63 }
  0x20   :  { %2322 = vmatprep.subr.bf16.mxu0 %v2321_v2 }
  0xe1   :  { %v2028_v37 = vpop.f32.mrb[0].mxu0 }
  0xe2   :  { %v174_v38 = vadd.f32 %v2028_v37, %v1797_v36  ;;  %v168_v39 = vpop.f32.mrb[1].mxu0 }
  0xe3   :  { %v169_v40 = vadd.f32 %v1797_v36, %v168_v39  ;;  %v521_v39 = vld [vmem:[%s3139_s3] sm:$0xff] }
  0xe4   :  { %v208_v43 = vmax.f32 %v174_v38, 0.0 }
  0xe5   :  { %v207_v41 = vmax.f32 %v169_v40, 0.0  ;;  %v2031_v42 = vpop.f32.mrb[2].mxu0  ;;  %v1843_v40 = vld [vmem:[#allocation2] ss:$0 sm:$0xff] }
  0xe6   :  { %v184_v44 = vadd.f32 %v2031_v42, %v1797_v36  ;;  %v178_v45 = vpop.f32.mrb[3].mxu0  ;;  %v604_v42 = vld [vmem:[%s3140_s4] sm:$0xff] }
  0xe7   :  { %v179_v46 = vadd.f32 %v1797_v36, %v178_v45  ;;  %2054 = vmatprep.mubr.msk.f32.mxu1 %vm230_vm1, %v207_v41  ;;  %v605_v41 = vld [vmem:[%s3140_s4 + $0x8] sm:$0xff]  ;;  %v638_v45 = vsel %vm637_vm2, %v604_v42, 0.0 }
  0xe8   :  { %2055 = vmatmul.mubr.msk.f32.vlgmr.msra.gmra.mrb[0].mxu1 %vm230_vm1, %v208_v43  ;;  %v210_v49 = vmax.f32 %v184_v44, 0.0  ;;  %v2507_v43 = vmov 0   ;;  %v639_v44 = vsel %vm637_vm2, %v605_v41, 0.0 }
  0xe9   :  { %v209_v47 = vmax.f32 %v179_v46, 0.0  ;;  %v2034_v48 = vpop.f32.mrb[4].mxu0  ;;  %2411 = vset.pattern.permute.xlu0 %v2507_v43  ;;  %2412 = vset.pattern.permute.xlu1 %v2507_v43  ;;  %v2810_v46 = vadd.f32 %v639_v44, %v638_v45  ;;  %v1269_v43 = vld [vmem:[%s3150_s14 + $0x20] sm:$0xff]  ;;  %v1270_v44 = vld [vmem:[%s3150_s14 + $0x28] sm:$0xff] }
  0xea   :  { %v194_v50 = vadd.f32 %v2034_v48, %v1797_v36  ;;  %v188_v51 = vpop.f32.mrb[5].mxu0  ;;  %951 = vperm.xlu0 %2411, %v1843_v40   ;;  %617 = vperm.xlu1 %2412, %v605_v41   ;;  %v1267_v40 = vld [vmem:[%s3150_s14 + $0x10] sm:$0xff]  ;;  %v1268_v41 = vld [vmem:[%s3150_s14 + $0x18] sm:$0xff]  ;;  %v2915_v45 = vpack.c.bf16 %v1270_v44, %v1269_v43 }
  0xeb   :  { %v189_v52 = vadd.f32 %v1797_v36, %v188_v51  ;;  %2057 = vmatprep.mubr.msk.f32.mxu1 %vm230_vm1, %v209_v47  ;;  %v1815_v47 = vld [vmem:[%s3147_s11] ss:$0 sm:$0xff] }
  0xec   :  { %2058 = vmatmul.mubr.msk.f32.gmra.mrb[2].mxu1 %vm230_vm1, %v210_v49  ;;  %v212_v55 = vmax.f32 %v194_v50, 0.0 }
  0xed   :  { %v211_v53 = vmax.f32 %v189_v52, 0.0  ;;  %v2037_v54 = vpop.f32.mrb[6].mxu0 }
  0xee   :  { %v204_v56 = vadd.f32 %v2037_v54, %v1797_v36  ;;  %v198_v57 = vpop.f32.mrb[7].mxu0  ;;  %612 = vperm.xlu0 %2411, %v604_v42   ;;  %v2903_v42 = vpack.c.bf16 %v1268_v41, %v1267_v40 }
  0xef   :  { %v199_v58 = vadd.f32 %v1797_v36, %v198_v57  ;;  %2060 = vmatprep.mubr.msk.f32.mxu1 %vm230_vm1, %v211_v53 }
  0xf0   :  { %2061 = vmatmul.mubr.msk.f32.gmra.mrb[4].mxu1 %vm230_vm1, %v212_v55  ;;  %v214_v60 = vmax.f32 %v204_v56, 0.0 }
  0xf1   :  { %v213_v59 = vmax.f32 %v199_v58, 0.0 }
  0xf3   :  { %2063 = vmatprep.mubr.msk.f32.mxu1 %vm230_vm1, %v213_v59 }
  0xf4   :  { %2064 = vmatmul.mubr.msk.f32.gmra.mrb[6].mxu1 %vm230_vm1, %v214_v60 }
  0xf5   :  { %2110 = vmatprep.mubr.msk.f32.mxu1 %vm230_vm1, %v521_v39 }
 0x1bb   :  { %v2056_v4 = vpop.f32.mrb[0].mxu1 }
 0x1bc   :  { %v327_v5 = vadd.f32 %v2056_v4, %v1806_v3  ;;  %v321_v7 = vpop.f32.mrb[1].mxu1 }
 0x1bd   :  { %v322_v8 = vadd.f32 %v1806_v3, %v321_v7 }
 0x1be   :  { %v361_v13 = vmax.f32 %v327_v5, 0.0 }
 0x1bf   :  { %v360_v11 = vmax.f32 %v322_v8, 0.0  ;;  %v2059_v12 = vpop.f32.mrb[2].mxu1  ;;  %v522_v8 = vld [vmem:[%s3139_s3 + $0x8] sm:$0xff] }
 0x1c0   :  { %v337_v14 = vadd.f32 %v2059_v12, %v1806_v3  ;;  %v331_v15 = vpop.f32.mrb[3].mxu1 }
 0x1c1   :  { %v332_v24 = vadd.f32 %v1806_v3, %v331_v15  ;;  %2082 = vmatprep.mubr.msk.f32.mxu0 %vm230_vm1, %v360_v11 }
 0x1c2   :  { %2083 = vmatmul.mubr.msk.f32.vlgmr.msra.gmra.mrb[8].mxu0 %vm230_vm1, %v361_v13  ;;  %v363_v27 = vmax.f32 %v337_v14, 0.0 }
 0x1c3   :  { %v362_v25 = vmax.f32 %v332_v24, 0.0  ;;  %v2062_v26 = vpop.f32.mrb[4].mxu1  ;;  %2324 = vmatpush3.bf16.msra.mxu0 %v2321_v2 }
 0x1c4   :  { %v347_v28 = vadd.f32 %v2062_v26, %v1806_v3  ;;  %v341_v29 = vpop.f32.mrb[5].mxu1  ;;  %2326 = vmatprep.subr.bf16.mxu0 %v2325_v18 }
 0x1c5   :  { %v342_v30 = vadd.f32 %v1806_v3, %v341_v29  ;;  %2085 = vmatprep.mubr.msk.f32.mxu0 %vm230_vm1, %v362_v25  ;;  %v658_v29 = vld [vmem:[%s3141_s5 + $0x8] sm:$0xff] }
 0x1c6   :  { %2086 = vmatmul.mubr.msk.f32.gmra.mrb[10].mxu0 %vm230_vm1, %v363_v27  ;;  %v365_v33 = vmax.f32 %v347_v28, 0.0 }
 0x1c7   :  { %v364_v31 = vmax.f32 %v342_v30, 0.0  ;;  %v2065_v32 = vpop.f32.mrb[6].mxu1  ;;  %2328 = vmatpush3.bf16.msra.mxu0 %v2325_v18 }
 0x1c8   :  { %v357_v34 = vadd.f32 %v2065_v32, %v1806_v3  ;;  %v351_v35 = vpop.f32.mrb[7].mxu1  ;;  %2346 = vmatprep.subr.bf16.mxu0 %v2321_v2 }
 0x1c9   :  { %v352_v36 = vadd.f32 %v1806_v3, %v351_v35  ;;  %2088 = vmatprep.mubr.msk.f32.mxu0 %vm230_vm1, %v364_v31  ;;  %v659_v31 = vld [vmem:[%s3141_s5 + $0x10] sm:$0xff] }
 0x1ca   :  { %2089 = vmatmul.mubr.msk.f32.gmra.mrb[12].mxu0 %vm230_vm1, %v365_v33  ;;  %v367_v38 = vmax.f32 %v357_v34, 0.0  ;;  %v660_v34 = vld [vmem:[%s3141_s5 + $0x18] sm:$0xff] }
 0x1cb   :  { %v366_v37 = vmax.f32 %v352_v36, 0.0  ;;  %v661_v36 = vld [vmem:[%s3141_s5 + $0x20] sm:$0xff] }
 0x1cd   :  { %2091 = vmatprep.mubr.msk.f32.mxu0 %vm230_vm1, %v366_v37 }
 0x1ce   :  { %2092 = vmatmul.mubr.msk.f32.gmra.mrb[14].mxu0 %vm230_vm1, %v367_v38 }
 0x1cf   :  { %2121 = vmatprep.mubr.msk.f32.mxu0 %vm77_vm0, %v2617_v6  ;;  %v970_v6 = vld [vmem:[%s3159_s8] sm:$0xff] }
 0x1d2   :  { %2122 = vmatmul.mubr.msk.f32.vlgmr.msra.gmra.mrb[16].mxu0 %vm77_vm0, %v2642_v16  ;;  %v971_v16 = vld [vmem:[%s3159_s8 + $0x8] sm:$0xff] }
 0x1d3   :  { %2348 = vmatpush3.bf16.msra.mxu0 %v2321_v2  ;;  %2124 = vmatprep.mubr.msk.f32.mxu0 %vm77_vm0, %v2647_v17  ;;  %v972_v17 = vld [vmem:[%s3159_s8 + $0x10] sm:$0xff] }
 0x1d4   :  { %2350 = vmatprep.subr.bf16.mxu0 %v2325_v18 }
 0x1d6   :  { %2125 = vmatmul.mubr.msk.f32.gmra.mrb[18].mxu0 %vm77_vm0, %v2656_v19  ;;  %v973_v19 = vld [vmem:[%s3159_s8 + $0x18] sm:$0xff] }
 0x1d7   :  { %2127 = vmatprep.mubr.msk.f32.mxu0 %vm77_vm0, %v2661_v20  ;;  %2352 = vmatpush3.bf16.msra.mxu0 %v2325_v18  ;;  %v974_v20 = vld [vmem:[%s3159_s8 + $0x20] sm:$0xff] }
 0x1da   :  { %2128 = vmatmul.mubr.msk.f32.gmra.mrb[20].mxu0 %vm77_vm0, %v2670_v21  ;;  %v975_v21 = vld [vmem:[%s3159_s8 + $0x28] sm:$0xff] }
 0x1db   :  { %2130 = vmatprep.mubr.msk.f32.mxu0 %vm77_vm0, %v2675_v22  ;;  %v976_v22 = vld [vmem:[%s3159_s8 + $0x30] sm:$0xff] }
 0x1de   :  { %2131 = vmatmul.mubr.msk.f32.gmra.mrb[22].mxu0 %vm77_vm0, %v2684_v23  ;;  %v977_v23 = vld [vmem:[%s3159_s8 + $0x38] sm:$0xff] }
 0x1df   :  { %2169 = vmatprep.mubr.msk.f32.mxu0 %vm77_vm0, %v970_v6  ;;  %v662_v6 = vld [vmem:[%s3141_s5 + $0x28] sm:$0xff] }
 0x1e2   :  { %2170 = vmatmul.mubr.msk.f32.vlgmr.msra.gmra.mrb[24].mxu0 %vm77_vm0, %v971_v16 }
 0x1e3   :  { %2172 = vmatprep.mubr.msk.f32.mxu0 %vm77_vm0, %v972_v17  ;;  %v663_v17 = vld [vmem:[%s3141_s5 + $0x30] sm:$0xff] }
 0x1e6   :  { %2173 = vmatmul.mubr.msk.f32.gmra.mrb[26].mxu0 %vm77_vm0, %v973_v19 }
 0x1e7   :  { %2175 = vmatprep.mubr.msk.f32.mxu0 %vm77_vm0, %v974_v20 }
 0x1ea   :  { %2176 = vmatmul.mubr.msk.f32.gmra.mrb[28].mxu0 %vm77_vm0, %v975_v21  ;;  %v664_v21 = vld [vmem:[%s3141_s5 + $0x38] sm:$0xff] }
 0x1eb   :  { %2178 = vmatprep.mubr.msk.f32.mxu0 %vm77_vm0, %v976_v22  ;;  %v1265_v22 = vld [vmem:[%s3150_s14] sm:$0xff] }
 0x1ee   :  { %2179 = vmatmul.mubr.msk.f32.gmra.mrb[30].mxu0 %vm77_vm0, %v977_v23  ;;  %v1266_v23 = vld [vmem:[%s3150_s14 + $0x8] sm:$0xff] }
 0x1ef   :  { %v2369_v39 = vpack.c.bf16 %v1266_v23, %v1265_v22 }
 0x1f1   :  { %2370 = vmatprep.subr.bf16.mxu0 %v2369_v39 }
 0x1f2   :  { %2372 = vmatpush3.bf16.msra.mxu0 %v2369_v39 }
 0x1f3   :  { %2374 = vmatprep.subr.bf16.mxu0 %v2903_v42 }
 0x1f6   :  { %2376 = vmatpush3.bf16.msra.mxu0 %v2903_v42 }
 0x1f7   :  { %2378 = vmatprep.subr.bf16.mxu0 %v2915_v45 }
 0x1fa   :  { %2380 = vmatpush3.bf16.msra.mxu0 %v2915_v45 }
 0x295   :  { %v2084_v48 = vpop.f32.mrb[8].mxu0 }
 0x296   :  { %v479_v49 = vadd.f32 %v2084_v48, %v1815_v47  ;;  %v473_v50 = vpop.f32.mrb[9].mxu0  ;;  %v1272_v48 = vld [vmem:[%s3150_s14 + $0x38] sm:$0xff] }
 0x297   :  { %v474_v51 = vadd.f32 %v1815_v47, %v473_v50 }
 0x298   :  { %514 = vst.msk [vmem:[%s3153_s17 + $0x8] sm:$0xff] %vm512_vm3, %v479_v49 }
 0x299   :  { %513 = vst.msk [vmem:[%s3153_s17] sm:$0xff] %vm512_vm3, %v474_v51  ;;  %v2305_v52 = vpack.c.bf16 %v479_v49, %v474_v51  ;;  %v2087_v53 = vpop.f32.mrb[10].mxu0 }
 0x29a   :  { %v489_v54 = vadd.f32 %v2087_v53, %v1815_v47  ;;  %v483_v55 = vpop.f32.mrb[11].mxu0 }
 0x29b   :  { %v484_v56 = vadd.f32 %v1815_v47, %v483_v55  ;;  %2306 = vmatprep.subr.bf16.mxu1 %v2305_v52 }
 0x29c   :  { %516 = vst.msk [vmem:[%s3153_s17 + $0x18] sm:$0xff] %vm512_vm3, %v489_v54  ;;  %2308 = vmatpush3.bf16.msra.mxu1 %v2305_v52  ;;  %v2940_v52 = vld [vmem:[%s3149_s13] ss:$0 sm:$0xff] }
 0x29d   :  { %515 = vst.msk [vmem:[%s3153_s17 + $0x10] sm:$0xff] %vm512_vm3, %v484_v56  ;;  %v2309_v57 = vpack.c.bf16 %v489_v54, %v484_v56  ;;  %v2090_v58 = vpop.f32.mrb[12].mxu0  ;;  %v2943_v56 = vpop.permute.xlu0 %951 }
 0x29e   :  { %v499_v59 = vadd.f32 %v2090_v58, %v1815_v47  ;;  %v493_v60 = vpop.f32.mrb[13].mxu0 }
 0x29f   :  { %v494_v61 = vadd.f32 %v1815_v47, %v493_v60  ;;  %2310 = vmatprep.subr.bf16.mxu1 %v2309_v57 }
 0x2a0   :  { %518 = vst.msk [vmem:[%s3153_s17 + $0x28] sm:$0xff] %vm512_vm3, %v499_v59  ;;  %2312 = vmatpush3.bf16.msra.mxu1 %v2309_v57 }
 0x2a1   :  { %517 = vst.msk [vmem:[%s3153_s17 + $0x20] sm:$0xff] %vm512_vm3, %v494_v61  ;;  %v2313_v62 = vpack.c.bf16 %v499_v59, %v494_v61  ;;  %v2093_v63 = vpop.f32.mrb[14].mxu0 }
 0x2a2   :  { %v509_v0 = vadd.f32 %v2093_v63, %v1815_v47  ;;  %v503_v1 = vpop.f32.mrb[15].mxu0 }
 0x2a3   :  { %v504_v2 = vadd.f32 %v1815_v47, %v503_v1  ;;  %2314 = vmatprep.subr.bf16.mxu1 %v2313_v62  ;;  %v1271_v47 = vld [vmem:[%s3150_s14 + $0x30] sm:$0xff] }
 0x2a4   :  { %520 = vst.msk [vmem:[%s3153_s17 + $0x38] sm:$0xff] %vm512_vm3, %v509_v0  ;;  %2316 = vmatpush3.bf16.msra.mxu1 %v2313_v62  ;;  %v2927_v49 = vpack.c.bf16 %v1272_v48, %v1271_v47 }
 0x2a5   :  { %519 = vst.msk [vmem:[%s3153_s17 + $0x30] sm:$0xff] %vm512_vm3, %v504_v2  ;;  %v2317_v3 = vpack.c.bf16 %v509_v0, %v504_v2  ;;  %v2123_v4 = vpop.f32.mrb[16].mxu0 }
 0x2a6   :  { %v763_v5 = vpop.f32.mrb[17].mxu0  ;;  %2382 = vmatprep.subr.bf16.mxu0 %v2927_v49 }
 0x2a7   :  { %2318 = vmatprep.subr.bf16.mxu1 %v2317_v3  ;;  %v2329_v7 = vpack.c.bf16 %v2123_v4, %v763_v5  ;;  %2384 = vmatpush3.bf16.msra.mxu0 %v2927_v49 }
 0x2a8   :  { %2320 = vmatpush3.bf16.msra.mxu1 %v2317_v3  ;;  %2386 = vmatprep.subr.bf16.mxu0 %v2369_v39 }
 0x2a9   :  { %v2126_v9 = vpop.f32.mrb[18].mxu0  ;;  %2330 = vmatprep.subr.bf16.mxu1 %v2329_v7 }
 0x2aa   :  { %v773_v11 = vpop.f32.mrb[19].mxu0 }
 0x2ab   :  { %2111 = vmatmul.mubr.msk.f32.vlgmr.msra.gmra.mrb[8].mxu1 %vm230_vm1, %v522_v8  ;;  %v2333_v12 = vpack.c.bf16 %v2126_v9, %v773_v11 }
 0x2ac   :  { %2332 = vmatpush3.bf16.msra.mxu1 %v2329_v7  ;;  %2149 = vmatprep.mubr.msk.f32.mxu1 %vm230_vm1, %v657_v10 }
 0x2ad   :  { %v2129_v13 = vpop.f32.mrb[20].mxu0  ;;  %2334 = vmatprep.subr.bf16.mxu1 %v2333_v12 }
 0x2ae   :  { %v783_v14 = vpop.f32.mrb[21].mxu0 }
 0x2af   :  { %v2337_v15 = vpack.c.bf16 %v2129_v13, %v783_v14 }
 0x2b0   :  { %2336 = vmatpush3.bf16.msra.mxu1 %v2333_v12 }
 0x2b1   :  { %v2132_v18 = vpop.f32.mrb[22].mxu0  ;;  %2338 = vmatprep.subr.bf16.mxu1 %v2337_v15 }
 0x2b2   :  { %v793_v24 = vpop.f32.mrb[23].mxu0 }
 0x2b3   :  { %v2341_v25 = vpack.c.bf16 %v2132_v18, %v793_v24 }
 0x2b4   :  { %2340 = vmatpush3.bf16.msra.mxu1 %v2337_v15 }
 0x2b5   :  { %2342 = vmatprep.subr.bf16.mxu1 %v2341_v25  ;;  %v2171_v26 = vpop.f32.mrb[24].mxu0 }
 0x2b6   :  { %v1068_v27 = vpop.f32.mrb[25].mxu0 }
 0x2b7   :  { %v2353_v28 = vpack.c.bf16 %v2171_v26, %v1068_v27 }
 0x2b8   :  { %2344 = vmatpush3.bf16.msra.mxu1 %v2341_v25 }
 0x2b9   :  { %v2174_v30 = vpop.f32.mrb[26].mxu0  ;;  %2354 = vmatprep.subr.bf16.mxu1 %v2353_v28 }
 0x2ba   :  { %v1078_v32 = vpop.f32.mrb[27].mxu0 }
 0x2bb   :  { %2150 = vmatmul.mubr.msk.f32.vlgmr.msra.gmra.mrb[10].mxu1 %vm230_vm1, %v658_v29  ;;  %v2357_v33 = vpack.c.bf16 %v2174_v30, %v1078_v32 }
 0x2bc   :  { %2356 = vmatpush3.bf16.msra.mxu1 %v2353_v28  ;;  %2152 = vmatprep.mubr.msk.f32.mxu1 %vm230_vm1, %v659_v31 }
 0x2bd   :  { %v2177_v35 = vpop.f32.mrb[28].mxu0  ;;  %2358 = vmatprep.subr.bf16.mxu1 %v2357_v33 }
 0x2be   :  { %v1088_v37 = vpop.f32.mrb[29].mxu0 }
 0x2bf   :  { %2153 = vmatmul.mubr.msk.f32.gmra.mrb[12].mxu1 %vm230_vm1, %v660_v34  ;;  %v2361_v38 = vpack.c.bf16 %v2177_v35, %v1088_v37 }
 0x2c0   :  { %2360 = vmatpush3.bf16.msra.mxu1 %v2357_v33  ;;  %2155 = vmatprep.mubr.msk.f32.mxu1 %vm230_vm1, %v661_v36 }
 0x2c1   :  { %v2180_v16 = vpop.f32.mrb[30].mxu0  ;;  %2362 = vmatprep.subr.bf16.mxu1 %v2361_v38 }
 0x2c2   :  { %v1098_v19 = vpop.f32.mrb[31].mxu0 }
 0x2c3   :  { %2156 = vmatmul.mubr.msk.f32.gmra.mrb[14].mxu1 %vm230_vm1, %v662_v6  ;;  %v2365_v20 = vpack.c.bf16 %v2180_v16, %v1098_v19 }
 0x2c4   :  { %2364 = vmatpush3.bf16.msra.mxu1 %v2361_v38  ;;  %2158 = vmatprep.mubr.msk.f32.mxu1 %vm230_vm1, %v663_v17 }
 0x2c5   :  { %2366 = vmatprep.subr.bf16.mxu1 %v2365_v20 }
 0x2c7   :  { %2159 = vmatmul.mubr.msk.f32.gmra.mrb[16].mxu1 %vm230_vm1, %v664_v21 }
 0x2c8   :  { %2368 = vmatpush3.bf16.msra.mxu1 %v2365_v20  ;;  %2197 = vmatprep.mubr.msk.f32.mxu1 %vm230_vm1, %v657_v10 }
 0x2c9   :  { %2401 = vmatprep.subr.bf16.mxu1 %v2369_v39 }
 0x2cb   :  { %2198 = vmatmul.mubr.msk.f32.vlgmr.msra.gmra.mrb[18].mxu1 %vm230_vm1, %v658_v29 }
 0x2cc   :  { %2200 = vmatprep.mubr.msk.f32.mxu1 %vm230_vm1, %v659_v31  ;;  %2405 = vmatpush3.bf16.msra.mxu1 %v2369_v39 }
 0x2cd   :  { %2402 = vmatprep.subr.bf16.mxu1 %v2903_v42 }
 0x2cf   :  { %2201 = vmatmul.mubr.msk.f32.gmra.mrb[20].mxu1 %vm230_vm1, %v660_v34 }
 0x2d0   :  { %2203 = vmatprep.mubr.msk.f32.mxu1 %vm230_vm1, %v661_v36  ;;  %2406 = vmatpush3.bf16.msra.mxu1 %v2903_v42 }
 0x2d1   :  { %2403 = vmatprep.subr.bf16.mxu1 %v2915_v45 }
 0x2d3   :  { %2204 = vmatmul.mubr.msk.f32.gmra.mrb[22].mxu1 %vm230_vm1, %v662_v6 }
 0x2d4   :  { %2206 = vmatprep.mubr.msk.f32.mxu1 %vm230_vm1, %v663_v17  ;;  %2407 = vmatpush3.bf16.msra.mxu1 %v2915_v45 }
 0x2d5   :  { %2404 = vmatprep.subr.bf16.mxu1 %v2927_v49 }
 0x2d7   :  { %2207 = vmatmul.mubr.msk.f32.gmra.mrb[24].mxu1 %vm230_vm1, %v664_v21 }
 0x2d8   :  { %2408 = vmatpush3.bf16.msra.mxu1 %v2927_v49 }
 0x37e   :  { %v2933_v50 = vpop.f32.mrb[8].mxu1 }
 0x37f   :  { %v2935_v51 = vpop.f32.mrb[9].mxu1 }
 0x38e   :  { %v2151_v53 = vpop.f32.mrb[10].mxu1 }
 0x38f   :  { %v904_v54 = vadd.f32 %v2151_v53, %v2940_v52  ;;  %v898_v55 = vpop.f32.mrb[11].mxu1 }
 0x390   :  { %v899_v57 = vadd.f32 %v2940_v52, %v898_v55 }
 0x391   :  { %vm938_vm4 = vcmp.gt.f32.partialorder %v904_v54, 0.0  ;;  %v955_v58 = vmul.f32 %v2943_v56, %v904_v54 }
 0x392   :  { %vm937_vm5 = vcmp.gt.f32.partialorder %v899_v57, 0.0  ;;  %v954_v59 = vmul.f32 %v2943_v56, %v899_v57  ;;  %v2154_v60 = vpop.f32.mrb[12].mxu1 }
 0x393   :  { %v963_v61 = vsel %vm938_vm4, %v904_v54, %v955_v58  ;;  %v914_v62 = vadd.f32 %v2154_v60, %v2940_v52  ;;  %v908_v63 = vpop.f32.mrb[13].mxu1 }
 0x394   :  { %v1237_v0 = vsel %vm230_vm1, %v963_v61, 0.0  ;;  %v909_v1 = vadd.f32 %v2940_v52, %v908_v63  ;;  %v962_v2 = vsel %vm937_vm5, %v899_v57, %v954_v59 }
 0x395   :  { %vm940_vm6 = vcmp.gt.f32.partialorder %v914_v62, 0.0  ;;  %v957_v3 = vmul.f32 %v2943_v56, %v914_v62  ;;  %v1236_v4 = vsel %vm230_vm1, %v962_v2, 0.0  ;;  %2225 = vmatprep.mubr.msk.f32.mxu0 %vm230_vm1, %v962_v2 }
 0x396   :  { %vm939_vm7 = vcmp.gt.f32.partialorder %v909_v1, 0.0  ;;  %v956_v5 = vmul.f32 %v2943_v56, %v909_v1  ;;  %v1238_v7 = vadd.f32 %v1237_v0, %v1236_v4  ;;  %v2157_v8 = vpop.f32.mrb[14].mxu1  ;;  %2226 = vmatmul.mubr.msk.f32.vlgmr.msra.gmra.mrb[32].mxu0 %vm230_vm1, %v963_v61 }
 0x397   :  { %v924_v9 = vadd.f32 %v2157_v8, %v2940_v52  ;;  %v918_v10 = vpop.f32.mrb[15].mxu1  ;;  %2388 = vmatpush3.bf16.msra.mxu0 %v2369_v39  ;;  %v965_v13 = vsel %vm940_vm6, %v914_v62, %v957_v3 }
 0x398   :  { %v919_v11 = vadd.f32 %v2940_v52, %v918_v10  ;;  %v964_v12 = vsel %vm939_vm7, %v909_v1, %v956_v5  ;;  %2390 = vmatprep.subr.bf16.mxu0 %v2903_v42  ;;  %v1241_v27 = vsel %vm230_vm1, %v965_v13, 0.0 }
 0x399   :  { %vm942_vm8 = vcmp.gt.f32.partialorder %v924_v9, 0.0  ;;  %v959_v14 = vmul.f32 %v2943_v56, %v924_v9  ;;  %v1239_v15 = vsel %vm230_vm1, %v964_v12, 0.0  ;;  %2228 = vmatprep.mubr.msk.f32.mxu0 %vm230_vm1, %v964_v12 }
 0x39a   :  { %vm941_vm9 = vcmp.gt.f32.partialorder %v919_v11, 0.0  ;;  %v958_v18 = vmul.f32 %v2943_v56, %v919_v11  ;;  %v1240_v24 = vadd.f32 %v1239_v15, %v1238_v7  ;;  %v2160_v25 = vpop.f32.mrb[16].mxu1  ;;  %2229 = vmatmul.mubr.msk.f32.gmra.mrb[34].mxu0 %vm230_vm1, %v965_v13 }
 0x39b   :  { %v934_v26 = vadd.f32 %v2160_v25, %v2940_v52  ;;  %v928_v28 = vpop.f32.mrb[17].mxu1  ;;  %2392 = vmatpush3.bf16.msra.mxu0 %v2903_v42  ;;  %v967_v32 = vsel %vm942_vm8, %v924_v9, %v959_v14 }
 0x39c   :  { %v1242_v29 = vadd.f32 %v1241_v27, %v1240_v24  ;;  %v929_v30 = vadd.f32 %v2940_v52, %v928_v28  ;;  %v966_v31 = vsel %vm941_vm9, %v919_v11, %v958_v18  ;;  %2394 = vmatprep.subr.bf16.mxu0 %v2915_v45  ;;  %v1245_v6 = vsel %vm230_vm1, %v967_v32, 0.0 }
 0x39d   :  { %vm944_vm10 = vcmp.gt.f32.partialorder %v934_v26, 0.0  ;;  %v961_v33 = vmul.f32 %v2943_v56, %v934_v26  ;;  %v1243_v34 = vsel %vm230_vm1, %v966_v31, 0.0  ;;  %2231 = vmatprep.mubr.msk.f32.mxu0 %vm230_vm1, %v966_v31 }
 0x39e   :  { %vm943_vm11 = vcmp.gt.f32.partialorder %v929_v30, 0.0  ;;  %v960_v35 = vmul.f32 %v2943_v56, %v929_v30  ;;  %v1244_v36 = vadd.f32 %v1243_v34, %v1242_v29  ;;  %v2199_v37 = vpop.f32.mrb[18].mxu1  ;;  %2232 = vmatmul.mubr.msk.f32.gmra.mrb[36].mxu0 %vm230_vm1, %v967_v32 }
 0x39f   :  { %v1179_v38 = vadd.f32 %v2199_v37, %v2940_v52  ;;  %v1173_v16 = vpop.f32.mrb[19].mxu1  ;;  %2396 = vmatpush3.bf16.msra.mxu0 %v2915_v45  ;;  %v969_v21 = vsel %vm944_vm10, %v934_v26, %v961_v33 }
 0x3a0   :  { %v1246_v17 = vadd.f32 %v1245_v6, %v1244_v36  ;;  %v1174_v19 = vadd.f32 %v2940_v52, %v1173_v16  ;;  %v968_v20 = vsel %vm943_vm11, %v929_v30, %v960_v35  ;;  %2398 = vmatprep.subr.bf16.mxu0 %v2927_v49  ;;  %v1249_v43 = vsel %vm230_vm1, %v969_v21, 0.0 }
 0x3a1   :  { %v1221_v22 = vmul.f32 %v1179_v38, %v2943_v56  ;;  %v1247_v23 = vsel %vm230_vm1, %v968_v20, 0.0  ;;  %2234 = vmatprep.mubr.msk.f32.mxu0 %vm230_vm1, %v968_v20  ;;  %vm1213_vm12 = vcmp.gt.f32.partialorder %v1179_v38, 0.0 }
 0x3a2   :  { %vm1212_vm13 = vcmp.gt.f32.partialorder %v1174_v19, 0.0  ;;  %v1220_v39 = vmul.f32 %v1174_v19, %v2943_v56  ;;  %v1248_v40 = vadd.f32 %v1247_v23, %v1246_v17  ;;  %v2202_v41 = vpop.f32.mrb[20].mxu1  ;;  %2235 = vmatmul.mubr.msk.f32.gmra.mrb[38].mxu0 %vm230_vm1, %v969_v21 }
 0x3a3   :  { %v1189_v42 = vadd.f32 %v2202_v41, %v2940_v52  ;;  %v1183_v44 = vpop.f32.mrb[21].mxu1  ;;  %2400 = vmatpush3.bf16.msra.mxu0 %v2927_v49  ;;  %v1229_v53 = vsel %vm1213_vm12, %v1179_v38, %v1221_v22 }
 0x3a4   :  { %v1250_v45 = vadd.f32 %v1249_v43, %v1248_v40  ;;  %v1184_v47 = vadd.f32 %v2940_v52, %v1183_v44  ;;  %v1228_v48 = vsel %vm1212_vm13, %v1174_v19, %v1220_v39 }
 0x3a5   :  { %v1223_v54 = vmul.f32 %v1189_v42, %v2943_v56  ;;  %2253 = vmatprep.mubr.msk.f32.mxu0 %vm230_vm1, %v1228_v48  ;;  %vm1215_vm14 = vcmp.gt.f32.partialorder %v1189_v42, 0.0 }
 0x3a6   :  { %vm1214_vm15 = vcmp.gt.f32.partialorder %v1184_v47, 0.0  ;;  %v1222_v55 = vmul.f32 %v1184_v47, %v2943_v56  ;;  %v2205_v57 = vpop.f32.mrb[22].mxu1  ;;  %2254 = vmatmul.mubr.msk.f32.vlgmr.msra.gmra.mrb[40].mxu0 %vm230_vm1, %v1229_v53  ;;  %v1251_v11 = vrot.slane %v1250_v45, 4 }
 0x3a7   :  { %v1199_v58 = vadd.f32 %v2205_v57, %v2940_v52  ;;  %v1193_v59 = vpop.f32.mrb[23].mxu1  ;;  %v1231_v61 = vsel %vm1215_vm14, %v1189_v42, %v1223_v54  ;;  %v607_v54 = vld [vmem:[%s3138_s2 + $0x8] sm:$0xff] }
 0x3a8   :  { %v1194_v49 = vadd.f32 %v2940_v52, %v1193_v59  ;;  %v1230_v60 = vsel %vm1214_vm15, %v1184_v47, %v1222_v55 }
 0x3a9   :  { %v1225_v62 = vmul.f32 %v1199_v58, %v2943_v56  ;;  %2256 = vmatprep.mubr.msk.f32.mxu1 %vm230_vm1, %v1230_v60  ;;  %vm1217_vm0 = vcmp.gt.f32.partialorder %v1199_v58, 0.0 }
 0x3aa   :  { %vm1216_vm2 = vcmp.gt.f32.partialorder %v1194_v49, 0.0  ;;  %v1224_v63 = vmul.f32 %v1194_v49, %v2943_v56  ;;  %v2208_v0 = vpop.f32.mrb[24].mxu1  ;;  %2257 = vmatmul.mubr.msk.f32.vlgmr.msra.gmra.mrb[26].mxu1 %vm230_vm1, %v1231_v61 }
 0x3ab   :  { %v1209_v1 = vadd.f32 %v2208_v0, %v2940_v52  ;;  %v1203_v2 = vpop.f32.mrb[25].mxu1  ;;  %v1233_v7 = vsel %vm1217_vm0, %v1199_v58, %v1225_v62  ;;  %v618_v62 = vpop.permute.xlu1 %617 }
 0x3ac   :  { %v1204_v3 = vadd.f32 %v2940_v52, %v1203_v2  ;;  %v1232_v4 = vsel %vm1216_vm2, %v1194_v49, %v1224_v63  ;;  %v1252_v52 = vadd.f32 %v1251_v11, %v1250_v45  ;;  %v609_v49 = vsub.f32 %v2933_v50, %v607_v54 }
 0x3ad   :  { %v1227_v5 = vmul.f32 %v1209_v1, %v2943_v56  ;;  %2259 = vmatprep.mubr.msk.f32.mxu1 %vm230_vm1, %v1232_v4  ;;  %vm1219_vm4 = vcmp.gt.f32.partialorder %v1209_v1, 0.0 }
 0x3ae   :  { %vm1218_vm5 = vcmp.gt.f32.partialorder %v1204_v3, 0.0  ;;  %v1226_v8 = vmul.f32 %v1204_v3, %v2943_v56  ;;  %2260 = vmatmul.mubr.msk.f32.gmra.mrb[28].mxu1 %vm230_vm1, %v1233_v7  ;;  %v1253_v12 = vrot.slane %v1252_v52, 2  ;;  %v621_v4 = vmul.f32 %v618_v62, %v609_v49 }
 0x3af   :  { %v1235_v10 = vsel %vm1219_vm4, %v1209_v1, %v1227_v5 }
 0x3b0   :  { %v1234_v9 = vsel %vm1218_vm5, %v1204_v3, %v1226_v8  ;;  %v1254_v13 = vadd.f32 %v1253_v12, %v1252_v52  ;;  %v606_v3 = vld [vmem:[%s3138_s2] sm:$0xff]  ;;  %v623_v12 = vmul.f32 %v621_v4, %v621_v4  ;;  %s2508_s2 = smov [#allocation3]  }
 0x3b1   :  { %2262 = vmatprep.mubr.msk.f32.mxu1 %vm230_vm1, %v1234_v9  ;;  %s1785_s25 = sshll.u32 %s2508_s2, 4  ;;  %s1786_s25 = int_to_ptr.vmem [resolvable:$true] %s1785_s25 }
 0x3b2   :  { %2263 = vmatmul.mubr.msk.f32.gmra.mrb[30].mxu1 %vm230_vm1, %v1235_v10  ;;  %v1255_v14 = vrot.slane %v1254_v13, 1  ;;  %v608_v10 = vsub.f32 %v2935_v51, %v606_v3  ;;  %s2483_s26 = scalar_lea.vmem %s1786_s25, 16  ;;  %s2487_s27 = scalar_lea.vmem %s1786_s25, 32 }
 0x3b3   :  { %p2484_p0 = scmp.ne.s32.totalorder %s1786_s25, %s2483_s26  ;;  %p2488_p1 = scmp.lt.s32.totalorder %s1786_s25, %s1786_s25 }
 0x3b4   :  { %v1256_v15 = vadd.f32 %v1255_v14, %v1254_v13  ;;  %v613_v13 = vpop.permute.xlu0 %612  ;;  %p2489_p2 = scmp.lt.s32.totalorder %s2487_s27, %s2483_s26 }
 0x3b5   :  { %v620_v14 = vmul.f32 %v613_v13, %v608_v10 }
 0x3b6   :  { %v1258_v18 = vmul.f32 0.015625, %v1256_v15  ;;  %p2490_p3 = por %p2489_p2, %p2488_p1 }
 0x3b8   :  { %v1259_v24 = vsub.f32 0.0, %v1258_v18  ;;  %v627_v18 = vsel %vm512_vm3, %v623_v12, 0.0  ;;  %p2491_p4 = pnand %p2490_p3, %p2484_p0 }
 0x3ba   :  { %v1260_v25 = vmul.f32 1.442695, %v1259_v24  ;;  %v622_v24 = vmul.f32 %v620_v14, %v620_v14 }
 0x3bc   :  { %2413 = vpow2.f32 %v1260_v25  ;;  %v624_v51 = vsel %vm512_vm3, %v622_v24, 0.0 }
 0x3c6   :  { %v2414_v26 = vpop.eup %2413 }
 0x3c7   :  { %v1262_v56 = vadd.f32 1.0, %v2414_v26 }
 0x3c9   :  { %2415 = vrcp.f32 %v1262_v56 }
 0x3d3   :  { %v2416_v27 = vpop.eup %2415 }
 0x469   :  { %v2227_v28 = vpop.f32.mrb[32].mxu0 }
 0x46a   :  { %v1532_v29 = vmul.f32 %v2416_v27, %v2227_v28  ;;  %v1363_v30 = vpop.f32.mrb[33].mxu0 }
 0x46b   :  { %v1531_v31 = vmul.f32 %v2416_v27, %v1363_v30 }
 0x46c   :  { %v1542_v32 = vsel %vm230_vm1, %v1532_v29, 0.0 }
 0x46d   :  { %v2230_v33 = vpop.f32.mrb[34].mxu0  ;;  %1543 = vadd.xlane.f32.xlu0 %v1542_v32  ;;  %v1539_v34 = vsel %vm230_vm1, %v1531_v31, 0.0 }
 0x46e   :  { %v1534_v35 = vmul.f32 %v2416_v27, %v2230_v33  ;;  %v1373_v36 = vpop.f32.mrb[35].mxu0  ;;  %1540 = vadd.xlane.f32.xlu1 %v1539_v34 }
 0x46f   :  { %v1533_v37 = vmul.f32 %v2416_v27, %v1373_v36 }
 0x470   :  { %v1548_v38 = vsel %vm230_vm1, %v1534_v35, 0.0 }
 0x471   :  { %v2233_v6 = vpop.f32.mrb[36].mxu0  ;;  %v1545_v16 = vsel %vm230_vm1, %v1533_v37, 0.0 }
 0x472   :  { %v1536_v17 = vmul.f32 %v2416_v27, %v2233_v6  ;;  %v1383_v19 = vpop.f32.mrb[37].mxu0  ;;  %1546 = vadd.xlane.f32.xlu0 %v1545_v16  ;;  %1549 = vadd.xlane.f32.xlu1 %v1548_v38 }
 0x473   :  { %v1535_v20 = vmul.f32 %v2416_v27, %v1383_v19 }
 0x474   :  { %v1554_v21 = vsel %vm230_vm1, %v1536_v17, 0.0 }
 0x475   :  { %v2236_v22 = vpop.f32.mrb[38].mxu0  ;;  %v1551_v42 = vsel %vm230_vm1, %v1535_v20, 0.0 }
 0x476   :  { %v1538_v23 = vmul.f32 %v2416_v27, %v2236_v22  ;;  %v1393_v39 = vpop.f32.mrb[39].mxu0  ;;  %1555 = vadd.xlane.f32.xlu1 %v1554_v21 }
 0x477   :  { %v1537_v40 = vmul.f32 %v2416_v27, %v1393_v39 }
 0x478   :  { %v1560_v50 = vsel %vm230_vm1, %v1538_v23, 0.0 }
 0x479   :  { %v2255_v41 = vpop.f32.mrb[40].mxu0  ;;  %v1557_v61 = vsel %vm230_vm1, %v1537_v40, 0.0 }
 0x47a   :  { %v1564_v43 = vmul.f32 %v2416_v27, %v2255_v41  ;;  %v1492_v44 = vpop.f32.mrb[41].mxu0  ;;  %1552 = vadd.xlane.f32.xlu1 %v1551_v42 }
 0x47b   :  { %v1563_v45 = vmul.f32 %v2416_v27, %v1492_v44 }
 0x47c   :  { %v1574_v47 = vsel %vm230_vm1, %v1564_v43, 0.0 }
 0x47d   :  { %v2258_v48 = vpop.f32.mrb[26].mxu1  ;;  %1575 = vadd.xlane.f32.xlu0 %v1574_v47  ;;  %v1571_v53 = vsel %vm230_vm1, %v1563_v45, 0.0 }
 0x47e   :  { %v1566_v55 = vmul.f32 %v2416_v27, %v2258_v48  ;;  %v1502_v57 = vpop.f32.mrb[27].mxu1  ;;  %1572 = vadd.xlane.f32.xlu1 %v1571_v53 }
 0x47f   :  { %v1565_v58 = vmul.f32 %v2416_v27, %v1502_v57 }
 0x480   :  { %v1580_v59 = vsel %vm230_vm1, %v1566_v55, 0.0 }
 0x481   :  { %v2261_v60 = vpop.f32.mrb[28].mxu1  ;;  %1581 = vadd.xlane.f32.xlu0 %v1580_v59  ;;  %v1577_v2 = vsel %vm230_vm1, %v1565_v58, 0.0 }
 0x482   :  { %v1568_v63 = vmul.f32 %v2416_v27, %v2261_v60  ;;  %v1512_v0 = vpop.f32.mrb[29].mxu1  ;;  %1558 = vadd.xlane.f32.xlu1 %v1557_v61 }
 0x483   :  { %v1567_v1 = vmul.f32 %v2416_v27, %v1512_v0 }
 0x484   :  { %v1586_v11 = vsel %vm230_vm1, %v1568_v63, 0.0 }
 0x485   :  { %v2264_v5 = vpop.f32.mrb[30].mxu1  ;;  %1578 = vadd.xlane.f32.xlu0 %v1577_v2  ;;  %v1583_v15 = vsel %vm230_vm1, %v1567_v1, 0.0 }
 0x486   :  { %v1570_v7 = vmul.f32 %v2416_v27, %v2264_v5  ;;  %v1522_v8 = vpop.f32.mrb[31].mxu1  ;;  %1561 = vadd.xlane.f32.xlu1 %v1560_v50 }
 0x487   :  { %v1569_v9 = vmul.f32 %v2416_v27, %v1522_v8 }
 0x488   :  { %v1592_v52 = vsel %vm230_vm1, %v1570_v7, 0.0 }
 0x489   :  { %1587 = vadd.xlane.f32.xlu0 %v1586_v11  ;;  %v1589_v25 = vsel %vm230_vm1, %v1569_v9, 0.0  ;;  %vm1777_vm1 = vcmask 0  }
 0x48a   :  { %1593 = vadd.xlane.f32.xlu1 %v1592_v52 }
 0x48d   :  { %1584 = vadd.xlane.f32.xlu0 %v1583_v15 }
 0x48e   :  { %628 = vadd.xlane.f32.xlu1 %v627_v18 }
 0x491   :  { %1590 = vadd.xlane.f32.xlu0 %v1589_v25 }
 0x495   :  { %625 = vadd.xlane.f32.xlu0 %v624_v51 }
 0x4fa   :  { %v3034_v26 = vpop.xlane.xlu0 %1543 }
 0x4fb   :  { %v1596_v56 = vsub.f32 0.0, %v3034_v26  ;;  %v3037_v27 = vpop.xlane.xlu1 %1540 }
 0x4fc   :  { %v1595_v28 = vsub.f32 0.0, %v3037_v27  ;;  %v641_v27 = vrot.slane %v2810_v46, 4 }
 0x4fd   :  { %v1612_v29 = vand.u32 2147483647, %v1596_v56 }
 0x4fe   :  { %v1611_v30 = vand.u32 2147483647, %v1595_v28 }
 0x4ff   :  { %v1620_v31 = vsub.f32 0.0, %v1612_v29  ;;  %v3044_v32 = vpop.xlane.xlu0 %1546  ;;  %v3046_v33 = vpop.xlane.xlu1 %1549 }
 0x500   :  { %v1619_v34 = vsub.f32 0.0, %v1611_v30  ;;  %v1597_v35 = vsub.f32 0.0, %v3044_v32  ;;  %v1598_v36 = vsub.f32 0.0, %v3046_v33 }
 0x501   :  { %v1629_v37 = vmul.f32 1.442695, %v1620_v31 }
 0x502   :  { %v1627_v38 = vmul.f32 1.442695, %v1619_v34  ;;  %v1613_v6 = vand.u32 2147483647, %v1597_v35  ;;  %v1614_v16 = vand.u32 2147483647, %v1598_v36 }
 0x503   :  { %2417 = vpow2.f32 %v1629_v37  ;;  %v3054_v17 = vpop.xlane.xlu1 %1555 }
 0x504   :  { %2419 = vpow2.f32 %v1627_v38  ;;  %v1621_v19 = vsub.f32 0.0, %v1613_v6  ;;  %v1600_v20 = vsub.f32 0.0, %v3054_v17  ;;  %v1622_v21 = vsub.f32 0.0, %v1614_v16 }
 0x506   :  { %v1631_v22 = vmul.f32 1.442695, %v1621_v19  ;;  %v1616_v23 = vand.u32 2147483647, %v1600_v20  ;;  %v1633_v39 = vmul.f32 1.442695, %v1622_v21 }
 0x507   :  { %v3059_v40 = vpop.xlane.xlu1 %1552  ;;  %v1608_v33 = vmax.f32 %v1600_v20, 0.0 }
 0x508   :  { %2421 = vpow2.f32 %v1631_v22  ;;  %v1624_v41 = vsub.f32 0.0, %v1616_v23  ;;  %v1599_v42 = vsub.f32 0.0, %v3059_v40 }
 0x509   :  { %2423 = vpow2.f32 %v1633_v39 }
 0x50a   :  { %v1637_v43 = vmul.f32 1.442695, %v1624_v41  ;;  %v1615_v44 = vand.u32 2147483647, %v1599_v42  ;;  %v3064_v45 = vpop.xlane.xlu0 %1575 }
 0x50b   :  { %v1698_v47 = vand.u32 2147483647, %v3064_v45  ;;  %v3067_v48 = vpop.xlane.xlu1 %1572 }
 0x50c   :  { %2425 = vpow2.f32 %v1637_v43  ;;  %v1623_v53 = vsub.f32 0.0, %v1615_v44  ;;  %v1697_v54 = vand.u32 2147483647, %v3067_v48 }
 0x50d   :  { %v2418_v55 = vpop.eup %2417  ;;  %v1706_v57 = vsub.f32 0.0, %v1698_v47 }
 0x50e   :  { %v2420_v58 = vpop.eup %2419  ;;  %v1644_v59 = vadd.f32 1.0, %v2418_v55  ;;  %v1635_v49 = vmul.f32 1.442695, %v1623_v53  ;;  %v1705_v60 = vsub.f32 0.0, %v1697_v54  ;;  %v3070_v61 = vpop.xlane.xlu0 %1581 }
 0x50f   :  { %v1643_v62 = vadd.f32 1.0, %v2420_v58  ;;  %v1715_v63 = vmul.f32 1.442695, %v1706_v57  ;;  %v1700_v0 = vand.u32 2147483647, %v3070_v61  ;;  %v3073_v1 = vpop.xlane.xlu1 %1558 }
 0x510   :  { %2427 = vlog2.f32 %v1644_v59  ;;  %v1713_v2 = vmul.f32 1.442695, %v1705_v60  ;;  %v1601_v3 = vsub.f32 0.0, %v3073_v1 }
 0x511   :  { %2429 = vlog2.f32 %v1643_v62  ;;  %v1708_v4 = vsub.f32 0.0, %v1700_v0 }
 0x512   :  { %v2422_v5 = vpop.eup %2421  ;;  %2431 = vpow2.f32 %v1635_v49  ;;  %v1617_v50 = vand.u32 2147483647, %v1601_v3  ;;  %v3078_v7 = vpop.xlane.xlu0 %1578 }
 0x513   :  { %v1645_v8 = vadd.f32 1.0, %v2422_v5  ;;  %2433 = vpow2.f32 %v1715_v63  ;;  %v1719_v9 = vmul.f32 1.442695, %v1708_v4  ;;  %v3080_v10 = vpop.xlane.xlu1 %1561  ;;  %v2424_v11 = vpop.eup %2423  ;;  %v1699_v12 = vand.u32 2147483647, %v3078_v7 }
 0x514   :  { %2435 = vpow2.f32 %v1713_v2  ;;  %v1625_v52 = vsub.f32 0.0, %v1617_v50  ;;  %v1602_v13 = vsub.f32 0.0, %v3080_v10  ;;  %v1646_v25 = vadd.f32 1.0, %v2424_v11 }
 0x515   :  { %2437 = vlog2.f32 %v1645_v8  ;;  %v1707_v18 = vsub.f32 0.0, %v1699_v12  ;;  %v1604_v50 = vmax.f32 %v1596_v56, 0.0  ;;  %v1603_v8 = vmax.f32 %v1595_v28, 0.0 }
 0x516   :  { %v2426_v14 = vpop.eup %2425  ;;  %v1639_v15 = vmul.f32 1.442695, %v1625_v52  ;;  %v3084_v24 = vpop.xlane.xlu0 %1587  ;;  %2439 = vpow2.f32 %v1719_v9  ;;  %v1618_v51 = vand.u32 2147483647, %v1602_v13 }
 0x517   :  { %v3088_v29 = vpop.xlane.xlu1 %1593  ;;  %v1648_v30 = vadd.f32 1.0, %v2426_v14  ;;  %v1717_v31 = vmul.f32 1.442695, %v1707_v18  ;;  %v1702_v34 = vand.u32 2147483647, %v3084_v24 }
 0x518   :  { %2441 = vpow2.f32 %v1639_v15  ;;  %v1626_v37 = vsub.f32 0.0, %v1618_v51  ;;  %v1704_v38 = vand.u32 2147483647, %v3088_v29  ;;  %v1605_v15 = vmax.f32 %v1597_v35, 0.0 }
 0x519   :  { %2443 = vpow2.f32 %v1717_v31  ;;  %v1710_v16 = vsub.f32 0.0, %v1702_v34 }
 0x51a   :  { %v2428_v6 = vpop.eup %2427  ;;  %v3092_v19 = vpop.xlane.xlu0 %1584  ;;  %2445 = vlog2.f32 %v1646_v25  ;;  %v1641_v22 = vmul.f32 1.442695, %v1626_v37  ;;  %v1712_v23 = vsub.f32 0.0, %v1704_v38 }
 0x51b   :  { %v2430_v21 = vpop.eup %2429  ;;  %2447 = vlog2.f32 %v1648_v30  ;;  %v1723_v41 = vmul.f32 1.442695, %v1710_v16  ;;  %v1701_v43 = vand.u32 2147483647, %v3092_v19  ;;  %v1654_v62 = vmul.f32 0.6931472, %v2428_v6 }
 0x51c   :  { %v2432_v39 = vpop.eup %2431  ;;  %2449 = vpow2.f32 %v1641_v22  ;;  %v1727_v55 = vmul.f32 1.442695, %v1712_v23  ;;  %v1652_v2 = vmul.f32 0.6931472, %v2430_v21  ;;  %v642_v22 = vadd.f32 %v641_v27, %v2810_v46 }
 0x51d   :  { %v2434_v44 = vpop.eup %2433  ;;  %v1647_v47 = vadd.f32 1.0, %v2432_v39  ;;  %2451 = vpow2.f32 %v1723_v41  ;;  %v1709_v57 = vsub.f32 0.0, %v1701_v43  ;;  %v1668_v14 = vadd.f32 %v1654_v62, %v1604_v50 }
 0x51e   :  { %v2436_v53 = vpop.eup %2435  ;;  %v1730_v54 = vadd.f32 1.0, %v2434_v44  ;;  %v3095_v58 = vpop.xlane.xlu0 %1590  ;;  %v1667_v25 = vadd.f32 %v1652_v2, %v1603_v8  ;;  %v1606_v39 = vmax.f32 %v1598_v36, 0.0  ;;  %v1607_v41 = vmax.f32 %v1599_v42, 0.0 }
 0x51f   :  { %2453 = vlog2.f32 %v1647_v47  ;;  %v1729_v59 = vadd.f32 1.0, %v2436_v53  ;;  %v1703_v49 = vand.u32 2147483647, %v3095_v58  ;;  %v2438_v60 = vpop.eup %2437  ;;  %v1721_v63 = vmul.f32 1.442695, %v1709_v57 }
 0x520   :  { %2455 = vlog2.f32 %v1730_v54  ;;  %v2440_v0 = vpop.eup %2439  ;;  %v1656_v9 = vmul.f32 0.6931472, %v2438_v60  ;;  %v1675_v38 = vadd.f32 %v1668_v14, %v1667_v25  ;;  %v1690_v36 = vmax.f32 %v3064_v45, 0.0 }
 0x521   :  { %2457 = vlog2.f32 %v1729_v59  ;;  %v1711_v4 = vsub.f32 0.0, %v1703_v49  ;;  %v1732_v51 = vadd.f32 1.0, %v2440_v0  ;;  %v643_v49 = vrot.slane %v642_v22, 2 }
 0x522   :  { %v2442_v5 = vpop.eup %2441  ;;  %2459 = vpow2.f32 %v1727_v55  ;;  %v1669_v28 = vadd.f32 %v1656_v9, %v1605_v15  ;;  %v1689_v2 = vmax.f32 %v3067_v48, 0.0  ;;  %v1691_v8 = vmax.f32 %v3078_v7, 0.0 }
 0x523   :  { %v1649_v11 = vadd.f32 1.0, %v2442_v5  ;;  %2461 = vpow2.f32 %v1721_v63  ;;  %v1725_v52 = vmul.f32 1.442695, %v1711_v4  ;;  %v2444_v12 = vpop.eup %2443  ;;  %v1609_v4 = vmax.f32 %v1601_v3, 0.0  ;;  %v626_v3 = vpop.xlane.xlu0 %625 }
 0x524   :  { %v2446_v18 = vpop.eup %2445  ;;  %v1731_v30 = vadd.f32 1.0, %v2444_v12  ;;  %v1676_v23 = vadd.f32 %v1675_v38, %v1669_v28  ;;  %v644_v12 = vadd.f32 %v643_v49, %v642_v22  ;;  %v1610_v48 = vmax.f32 %v1602_v13, 0.0 }
 0x525   :  { %2463 = vlog2.f32 %v1649_v11  ;;  %v2448_v26 = vpop.eup %2447  ;;  %v1658_v6 = vmul.f32 0.6931472, %v2446_v18  ;;  %v1692_v27 = vmax.f32 %v3070_v61, 0.0  ;;  %v1693_v38 = vmax.f32 %v3092_v19, 0.0 }
 0x526   :  { %2465 = vpow2.f32 %v1725_v52  ;;  %v2450_v56 = vpop.eup %2449  ;;  %v1662_v54 = vmul.f32 0.6931472, %v2448_v26  ;;  %v645_v26 = vrot.slane %v644_v12, 1  ;;  %v1694_v22 = vmax.f32 %v3084_v24, 0.0 }
 0x527   :  { %2467 = vlog2.f32 %v1731_v30  ;;  %v2452_v31 = vpop.eup %2451  ;;  %v1650_v34 = vadd.f32 1.0, %v2450_v56  ;;  %v1670_v47 = vadd.f32 %v1658_v6, %v1606_v39  ;;  %v629_v56 = vpop.xlane.xlu1 %628  ;;  %v1695_v61 = vmax.f32 %v3095_v58, 0.0 }
 0x528   :  { %2469 = vlog2.f32 %v1732_v51  ;;  %v1734_v16 = vadd.f32 1.0, %v2452_v31  ;;  %v1672_v50 = vadd.f32 %v1662_v54, %v1608_v33 }
 0x529   :  { %v2454_v37 = vpop.eup %2453  ;;  %2471 = vlog2.f32 %v1650_v34  ;;  %v1677_v60 = vadd.f32 %v1676_v23, %v1670_v47  ;;  %v630_v34 = vadd.f32 %v629_v56, %v626_v3 }
 0x52a   :  { %v2456_v32 = vpop.eup %2455  ;;  %v1660_v35 = vmul.f32 0.6931472, %v2454_v37  ;;  %2473 = vlog2.f32 %v1734_v16  ;;  %v646_v16 = vadd.f32 %v645_v26, %v644_v12 }
 0x52b   :  { %v2458_v21 = vpop.eup %2457  ;;  %v1740_v62 = vmul.f32 0.6931472, %v2456_v32 }
 0x52c   :  { %v2460_v43 = vpop.eup %2459  ;;  %v1671_v53 = vadd.f32 %v1660_v35, %v1607_v41  ;;  %v1738_v46 = vmul.f32 0.6931472, %v2458_v21  ;;  %v631_v41 = vrot.slane %v630_v34, 4  ;;  %v647_v19 = vmul.f32 24.0, %v646_v16 }
 0x52d   :  { %v2462_v44 = vpop.eup %2461  ;;  %v1736_v55 = vadd.f32 1.0, %v2460_v43  ;;  %v1754_v17 = vadd.f32 %v1740_v62, %v1690_v36 }
 0x52e   :  { %v1733_v57 = vadd.f32 1.0, %v2462_v44  ;;  %v1678_v0 = vadd.f32 %v1677_v60, %v1671_v53  ;;  %v1753_v20 = vadd.f32 %v1738_v46, %v1689_v2  ;;  %v632_v49 = vadd.f32 %v631_v41, %v630_v34 }
 0x52f   :  { %v2464_v59 = vpop.eup %2463  ;;  %v648_v24 = vmax.f32 %v647_v19, 1.0 }
 0x530   :  { %v2466_v63 = vpop.eup %2465  ;;  %v1664_v40 = vmul.f32 0.6931472, %v2464_v59  ;;  %2475 = vlog2.f32 %v1733_v57  ;;  %v1679_v14 = vadd.f32 %v1678_v0, %v1672_v50  ;;  %v1761_v18 = vadd.f32 %v1754_v17, %v1753_v20 }
 0x531   :  { %v2468_v42 = vpop.eup %2467  ;;  %v1735_v5 = vadd.f32 1.0, %v2466_v63  ;;  %2477 = vlog2.f32 %v1736_v55  ;;  %v1696_v57 = vmax.f32 %v3088_v29, 0.0  ;;  %v633_v33 = vrot.slane %v632_v49, 2 }
 0x532   :  { %v1742_v9 = vmul.f32 0.6931472, %v2468_v42  ;;  %v2470_v11 = vpop.eup %2469  ;;  %v1673_v52 = vadd.f32 %v1664_v40, %v1609_v4 }
 0x533   :  { %2479 = vlog2.f32 %v1735_v5  ;;  %v2472_v45 = vpop.eup %2471  ;;  %v1744_v25 = vmul.f32 0.6931472, %v2470_v11  ;;  %v634_v42 = vadd.f32 %v633_v33, %v632_v49 }
 0x534   :  { %v1755_v15 = vadd.f32 %v1742_v9, %v1691_v8  ;;  %v1666_v1 = vmul.f32 0.6931472, %v2472_v45  ;;  %v1680_v51 = vadd.f32 %v1679_v14, %v1673_v52  ;;  %v2474_v30 = vpop.eup %2473  ;;  %2481 = vrcp.f32 %v648_v24 }
 0x535   :  { %v1756_v6 = vadd.f32 %v1744_v25, %v1692_v27  ;;  %v1748_v13 = vmul.f32 0.6931472, %v2474_v30  ;;  %v635_v4 = vrot.slane %v634_v42, 1 }
 0x536   :  { %v1674_v7 = vadd.f32 %v1666_v1, %v1610_v48  ;;  %v1762_v28 = vadd.f32 %v1761_v18, %v1755_v15 }
 0x537   :  { %v1758_v47 = vadd.f32 %v1748_v13, %v1694_v22  ;;  %v636_v29 = vadd.f32 %v635_v4, %v634_v42 }
 0x538   :  { %v1681_v31 = vadd.f32 %v1680_v51, %v1674_v7  ;;  %v1763_v39 = vadd.f32 %v1762_v28, %v1756_v6 }
 0x53a   :  { %v2476_v37 = vpop.eup %2475  ;;  %v1682_v10 = vrot.slane %v1681_v31, 4 }
 0x53b   :  { %v1746_v32 = vmul.f32 0.6931472, %v2476_v37  ;;  %v2478_v35 = vpop.eup %2477 }
 0x53c   :  { %v1683_v44 = vadd.f32 %v1682_v10, %v1681_v31  ;;  %v1752_v53 = vmul.f32 0.6931472, %v2478_v35 }
 0x53d   :  { %v2480_v21 = vpop.eup %2479  ;;  %v1757_v23 = vadd.f32 %v1746_v32, %v1693_v38 }
 0x53e   :  { %v1750_v43 = vmul.f32 0.6931472, %v2480_v21  ;;  %v1684_v60 = vrot.slane %v1683_v44, 2  ;;  %v1760_v62 = vadd.f32 %v1752_v53, %v1696_v57  ;;  %v2482_v11 = vpop.eup %2481 }
 0x53f   :  { %v1764_v54 = vadd.f32 %v1763_v39, %v1757_v23  ;;  %v650_v52 = vmul.f32 %v2482_v11, %v636_v29 }
 0x540   :  { %v1759_v55 = vadd.f32 %v1750_v43, %v1695_v61  ;;  %v1685_v40 = vadd.f32 %v1684_v60, %v1683_v44 }
 0x541   :  { %v1765_v59 = vadd.f32 %v1764_v54, %v1758_v47 }
 0x542   :  { %v1686_v2 = vrot.slane %v1685_v40, 1 }
 0x543   :  { %v1766_v46 = vadd.f32 %v1765_v59, %v1759_v55 }
 0x544   :  { %v1687_v50 = vadd.f32 %v1686_v2, %v1685_v40 }
 0x545   :  { %v1767_v63 = vadd.f32 %v1766_v46, %v1760_v62 }
 0x546   :  { %v1688_v17 = vmul.f32 0.015625, %v1687_v50 }
 0x547   :  { %v1768_v36 = vrot.slane %v1767_v63, 4 }
 0x549   :  { %v1769_v58 = vadd.f32 %v1768_v36, %v1767_v63 }
 0x54b   :  { %v1770_v0 = vrot.slane %v1769_v58, 2 }
 0x54d   :  { %v1771_v5 = vadd.f32 %v1770_v0, %v1769_v58 }
 0x54f   :  { %v1772_v8 = vrot.slane %v1771_v5, 1 }
 0x551   :  { %v1773_v9 = vadd.f32 %v1772_v8, %v1771_v5 }
 0x553   :  { %v1774_v20 = vmul.f32 0.015625, %v1773_v9 }
 0x555   :  { %v1775_v45 = vadd.f32 %v1774_v20, %v1688_v17 }
 0x557   :  { %v1776_v12 = vadd.f32 %v1775_v45, %v650_v52 }
 0x559   :  { %1778 = vst.msk [vmem:[#allocation3] sm:$0x1] %vm1777_vm1, %v1776_v12 }
 0x55a   :  { %2494 = shalt.err (!%p2491_p4)
}
 0x55b   :  { %s2495_s29 = scalar_lea.hbm %s3152_s16, 16 }
 0x55c   :  { %p2496_p5 = scmp.ne.s32.totalorder %s3152_s16, %s2495_s29  ;;  %p2499_p6 = scmp.lt.u32.totalorder %s2495_s29, %s3152_s16 }
 0x55e   :  { %p2501_p7 = pnand %p2499_p6, %p2496_p5 }
 0x560   :  { %2504 = shalt.err (!%p2501_p7)
}
 0x561   :  { %1788 = dma.vmem_to_hbm [thread:$0]  %s1786_s25, 16, %s3152_s16, [#allocation4]  }
 0x562   :  { %2505 = dma.done.wait [#allocation4], 16  }
 0x563   :  { %2506 = vsyncadd [#allocation4], 4294967280 }
 0x564   :  { %1796 = vsyncpa [#allocation4], 1 }

</bundles_post_ra>
